<compile_context>
chip_gen: v5e
topology: v5e:2x2
jax: 0.10.0
libtpu: 0.0.40
codegen_flags: <defaults>
</compile_context>

<pallas_src>
import jax
import jax.numpy as jnp
from jax.experimental import pallas as pl
from jax.experimental.pallas import tpu as pltpu

INPUT_SIZE = 28 * 28
HIDDEN_SIZES = [512, 256, 128, 64]
OUTPUT_SIZE = 10
PADDED_HIDDEN = 128       # last hidden layer (64) padded to a full lane width
PADDED_OUT = 128          # lane-dense output width
NEG_BIG = -1e30           # bias for padded logit lanes -> exp() == 0


def _round_up(a, m):
    return ((a + m - 1) // m) * m


def _chip_config():
    """(batch_tile_cap, vmem_limit_bytes) chosen per TPU generation."""
    kind = ""
    try:
        kind = jax.devices()[0].device_kind.lower()
    except Exception:
        pass
    if ("v5" in kind) or ("v6" in kind):
        # v5e / v6e: 128 MiB physical VMEM -> big tiles, generous scoped limit.
        return 2048, 64 << 20
    # v7x (64 MiB VMEM per TensorCore) and unknown chips: stay conservative.
    return 1024, 40 << 20


def _pick_tile(batch, tile_cap):
    """Sublane-aligned batch tile; force >= 2 grid steps when there is enough work
    (keeps both v7x TensorCores busy and minimizes batch-padding waste)."""
    b_al = _round_up(max(batch, 1), 8)
    n_tiles = pl.cdiv(b_al, tile_cap)
    if b_al >= 16:
        n_tiles = max(n_tiles, 2)
    return _round_up(pl.cdiv(b_al, n_tiles), 8)


def mlp_kernel(x_ref,
               w1_ref, b1_ref,
               w2_ref, b2_ref,
               w3_ref, b3_ref,
               w4_ref, b4_ref,
               w5_ref, b5_ref,
               o_ref):
    def dense(h, w_ref, b_ref):
        # bf16 x bf16 matmul on the MXU, f32 accumulation, f32 bias add.
        return jnp.dot(h.astype(jnp.bfloat16), w_ref[...],
                       preferred_element_type=jnp.float32) + b_ref[...]

    # Layer 1: Linear(784 -> 512) + ReLU
    h = jnp.maximum(dense(x_ref[...], w1_ref, b1_ref), 0.0)
    # Layer 2: Linear(512 -> 256) + ReLU
    h = jnp.maximum(dense(h, w2_ref, b2_ref), 0.0)
    # Layer 3: Linear(256 -> 128) + Tanh
    h = jnp.tanh(dense(h, w3_ref, b3_ref))
    # Layer 4: Linear(128 -> 128 [64 real + 64 zero-pad]) + LeakyReLU(0.1)
    h = dense(h, w4_ref, b4_ref)
    h = jnp.where(h > 0.0, h, 0.1 * h)
    # Output layer: Linear(128 -> 128 [10 real + 118 pad]) + Softmax.
    # Padded lanes carry bias -1e30 so exp() contributes exactly 0 to the sum.
    logits = dense(h, w5_ref, b5_ref)
    m = jnp.max(logits, axis=1, keepdims=True)
    e = jnp.exp(logits - m)
    inv = pl.reciprocal(jnp.sum(e, axis=1, keepdims=True), approx=True)
    o_ref[...] = (e * inv).astype(o_ref.dtype)


def prepare_params(params):
    """Cast weights to bf16; pad the 64-wide hidden layer and the 10-wide output to 128 lanes."""
    w1, b1, w2, b2, w3, b3, w4, b4, w5, b5 = params
    # Hidden-layer padding: LeakyReLU(0) == 0, so padded lanes stay exactly 0.
    w4p = jnp.zeros((w4.shape[0], PADDED_HIDDEN), jnp.float32).at[:, :w4.shape[1]].set(w4)
    b4p = jnp.zeros((1, PADDED_HIDDEN), jnp.float32).at[:, :b4.shape[1]].set(b4)
    # Output-layer padding: padded columns get bias -1e30 -> exp() == 0 in the softmax.
    w5p = jnp.zeros((PADDED_HIDDEN, PADDED_OUT), jnp.float32).at[:w5.shape[0], :OUTPUT_SIZE].set(w5)
    b5p = jnp.full((1, PADDED_OUT), NEG_BIG, jnp.float32).at[:, :OUTPUT_SIZE].set(b5)
    ws = [w.astype(jnp.bfloat16) for w in (w1, w2, w3, w4p, w5p)]
    bs = [b1, b2, b3, b4p, b5p]          # biases stay f32 (tiny, keeps -1e30 exact)
    out = []
    for w, b in zip(ws, bs):
        out.extend([w, b])
    return out


def simple_nn_forward(x, prepared_params, out_size=OUTPUT_SIZE,
                      tile_b=None, vmem_limit_bytes=None):
    """x: (B, 784) f32 (or bf16); prepared_params: output of prepare_params()."""
    B, K = x.shape
    cap, vmem_auto = _chip_config()
    if tile_b is None:
        tile_b = cap
    if vmem_limit_bytes is None:
        vmem_limit_bytes = vmem_auto

    tile = _pick_tile(B, tile_b)
    b_pad = _round_up(B, tile)

    # Feed x in bf16: halves the dominant per-tile HBM traffic (the MXU consumes bf16 anyway).
    x = x.astype(jnp.bfloat16)
    if b_pad != B:
        x = jnp.pad(x, ((0, b_pad - B), (0, 0)))

    padded_out = prepared_params[-1].shape[-1]   # 128

    in_specs = [pl.BlockSpec((tile, K), lambda i: (i, 0))]
    for p in prepared_params:
        # Constant block index: weights/biases are DMA'd once and stay VMEM-resident.
        in_specs.append(pl.BlockSpec(p.shape, lambda i: (0, 0)))
    out_spec = pl.BlockSpec((tile, padded_out), lambda i: (i, 0))

    out = pl.pallas_call(
        mlp_kernel,
        out_shape=jax.ShapeDtypeStruct((b_pad, padded_out), jnp.float32),
        grid=(b_pad // tile,),
        in_specs=in_specs,
        out_specs=out_spec,
        compiler_params=pltpu.CompilerParams(
            dimension_semantics=("parallel",),
            vmem_limit_bytes=vmem_limit_bytes,
        ),
    )(x, *prepared_params)
    return out[:B, :out_size]


def init_params(key, input_size, hidden_sizes, output_size):
    """Deterministic synthetic init (shapes match the PyTorch module; W stored as (in, out))."""
    dims = [input_size] + hidden_sizes + [output_size]
    params = []
    for i in range(len(dims) - 1):
        key, wk, bk = jax.random.split(key, 3)
        fan_in, fan_out = dims[i], dims[i + 1]
        scale = 1.0 / jnp.sqrt(jnp.float32(fan_in))
        w = jax.random.uniform(wk, (fan_in, fan_out), jnp.float32, -scale, scale)
        b = jax.random.uniform(bk, (1, fan_out), jnp.float32, -scale, scale)
        params.extend([w, b])
    return params


def reference_forward(x, prepared_params, out_size=OUTPUT_SIZE):
    """Pure-JAX reference mirroring the kernel's bf16-weight / f32-accumulate math."""
    w1, b1, w2, b2, w3, b3, w4, b4, w5, b5 = prepared_params

    def dense(h, w, b):
        return jnp.dot(h.astype(jnp.bfloat16), w, preferred_element_type=jnp.float32) + b

    h = jnp.maximum(dense(x, w1, b1), 0.0)
    h = jnp.maximum(dense(h, w2, b2), 0.0)
    h = jnp.tanh(dense(h, w3, b3))
    h = dense(h, w4, b4)
    h = jnp.where(h > 0.0, h, 0.1 * h)
    logits = dense(h, w5, b5)[:, :out_size]
    return jax.nn.softmax(logits, axis=1)


if __name__ == "__main__":
    key = jax.random.PRNGKey(0)
    key, xk = jax.random.split(key)
    raw_params = init_params(key, INPUT_SIZE, HIDDEN_SIZES, OUTPUT_SIZE)
    params = prepare_params(raw_params)

    # batch=8 exercises the single-tile path; batch=24 exercises the multi-tile
    # (grid >= 2, padded-batch) path used for megacore sharding.
    for batch in (8, 24):
        xb = jax.random.normal(jax.random.fold_in(xk, batch),
                               (batch, INPUT_SIZE), jnp.float32)
        out = jax.block_until_ready(simple_nn_forward(xb, params))
        ref = reference_forward(xb, params)
        assert out.shape == (batch, OUTPUT_SIZE)
        # bf16 weights/activations + approx reciprocal -> loosened (but meaningful) tolerance.
        assert jnp.allclose(out, ref, atol=5e-3, rtol=0.0), "mismatch vs reference"
        assert jnp.allclose(jnp.sum(out, axis=1), 1.0, atol=5e-3), "softmax rows must sum to 1"

    print("KERNEL_OK")
</pallas_src>

<mosaic_0001>
module attributes {stable_mosaic.version = 11 : i64} {
  func.func @mlp_kernel(%arg0: i32, %arg1: memref<8x784xbf16, #tpu.memory_space<vmem>>, %arg2: memref<784x512xbf16, #tpu.memory_space<vmem>>, %arg3: memref<1x512xf32, #tpu.memory_space<vmem>>, %arg4: memref<512x256xbf16, #tpu.memory_space<vmem>>, %arg5: memref<1x256xf32, #tpu.memory_space<vmem>>, %arg6: memref<256x128xbf16, #tpu.memory_space<vmem>>, %arg7: memref<1x128xf32, #tpu.memory_space<vmem>>, %arg8: memref<128x128xbf16, #tpu.memory_space<vmem>>, %arg9: memref<1x128xf32, #tpu.memory_space<vmem>>, %arg10: memref<128x128xbf16, #tpu.memory_space<vmem>>, %arg11: memref<1x128xf32, #tpu.memory_space<vmem>>, %arg12: memref<8x128xf32, #tpu.memory_space<vmem>>) attributes {dimension_semantics = [#tpu.dimension_semantics<parallel>], iteration_bounds = array<i64: 1>, scalar_prefetch = 0 : i64, scratch_operands = 0 : i64, tpu.core_type = #tpu.core_type<tc>, window_params = [{transform_indices = @transform_0, window_bounds = array<i64: 8, 784>}, {pipeline_mode = #tpu.pipeline_mode<synchronous>, transform_indices = @transform_1, window_bounds = array<i64: 784, 512>}, {pipeline_mode = #tpu.pipeline_mode<synchronous>, transform_indices = @transform_2, window_bounds = array<i64: 1, 512>}, {pipeline_mode = #tpu.pipeline_mode<synchronous>, transform_indices = @transform_3, window_bounds = array<i64: 512, 256>}, {pipeline_mode = #tpu.pipeline_mode<synchronous>, transform_indices = @transform_4, window_bounds = array<i64: 1, 256>}, {pipeline_mode = #tpu.pipeline_mode<synchronous>, transform_indices = @transform_5, window_bounds = array<i64: 256, 128>}, {pipeline_mode = #tpu.pipeline_mode<synchronous>, transform_indices = @transform_6, window_bounds = array<i64: 1, 128>}, {pipeline_mode = #tpu.pipeline_mode<synchronous>, transform_indices = @transform_7, window_bounds = array<i64: 128, 128>}, {pipeline_mode = #tpu.pipeline_mode<synchronous>, transform_indices = @transform_8, window_bounds = array<i64: 1, 128>}, {pipeline_mode = #tpu.pipeline_mode<synchronous>, transform_indices = @transform_9, window_bounds = array<i64: 128, 128>}, {pipeline_mode = #tpu.pipeline_mode<synchronous>, transform_indices = @transform_10, window_bounds = array<i64: 1, 128>}, {transform_indices = @transform_11, window_bounds = array<i64: 8, 128>}]} {
    %c0 = arith.constant 0 : index
    %c0_0 = arith.constant 0 : index
    %0 = vector.load %arg1[%c0, %c0_0] : memref<8x784xbf16, #tpu.memory_space<vmem>>, vector<8x784xbf16>
    %c0_1 = arith.constant 0 : index
    %c0_2 = arith.constant 0 : index
    %1 = vector.load %arg2[%c0_1, %c0_2] : memref<784x512xbf16, #tpu.memory_space<vmem>>, vector<784x512xbf16>
    %cst = arith.constant dense<0.000000e+00> : vector<8x512xf32>
    %2 = tpu.matmul %0, %1, %cst {dimension_numbers = #tpu.dot_dimension_numbers<[1], [0], [0], [1], [0, 0, 1, 1], [], []>} : vector<8x784xbf16>, vector<784x512xbf16>, vector<8x512xf32> -> vector<8x512xf32>
    %c0_3 = arith.constant 0 : index
    %c0_4 = arith.constant 0 : index
    %3 = vector.load %arg3[%c0_3, %c0_4] : memref<1x512xf32, #tpu.memory_space<vmem>>, vector<1x512xf32>
    %4 = vector.broadcast %3 : vector<1x512xf32> to vector<8x512xf32>
    %5 = arith.addf %2, %4 : vector<8x512xf32>
    %cst_5 = arith.constant 0.000000e+00 : f32
    %6 = vector.broadcast %cst_5 : f32 to vector<8x512xf32>
    %7 = arith.maximumf %5, %6 : vector<8x512xf32>
    %8 = arith.truncf %7 : vector<8x512xf32> to vector<8x512xbf16>
    %c0_6 = arith.constant 0 : index
    %c0_7 = arith.constant 0 : index
    %9 = vector.load %arg4[%c0_6, %c0_7] : memref<512x256xbf16, #tpu.memory_space<vmem>>, vector<512x256xbf16>
    %cst_8 = arith.constant dense<0.000000e+00> : vector<8x256xf32>
    %10 = tpu.matmul %8, %9, %cst_8 {dimension_numbers = #tpu.dot_dimension_numbers<[1], [0], [0], [1], [0, 0, 1, 1], [], []>} : vector<8x512xbf16>, vector<512x256xbf16>, vector<8x256xf32> -> vector<8x256xf32>
    %c0_9 = arith.constant 0 : index
    %c0_10 = arith.constant 0 : index
    %11 = vector.load %arg5[%c0_9, %c0_10] : memref<1x256xf32, #tpu.memory_space<vmem>>, vector<1x256xf32>
    %12 = vector.broadcast %11 : vector<1x256xf32> to vector<8x256xf32>
    %13 = arith.addf %10, %12 : vector<8x256xf32>
    %cst_11 = arith.constant 0.000000e+00 : f32
    %14 = vector.broadcast %cst_11 : f32 to vector<8x256xf32>
    %15 = arith.maximumf %13, %14 : vector<8x256xf32>
    %16 = arith.truncf %15 : vector<8x256xf32> to vector<8x256xbf16>
    %c0_12 = arith.constant 0 : index
    %c0_13 = arith.constant 0 : index
    %17 = vector.load %arg6[%c0_12, %c0_13] : memref<256x128xbf16, #tpu.memory_space<vmem>>, vector<256x128xbf16>
    %cst_14 = arith.constant dense<0.000000e+00> : vector<8x128xf32>
    %18 = tpu.matmul %16, %17, %cst_14 {dimension_numbers = #tpu.dot_dimension_numbers<[1], [0], [0], [1], [0, 0, 1, 1], [], []>} : vector<8x256xbf16>, vector<256x128xbf16>, vector<8x128xf32> -> vector<8x128xf32>
    %c0_15 = arith.constant 0 : index
    %c0_16 = arith.constant 0 : index
    %19 = vector.load %arg7[%c0_15, %c0_16] : memref<1x128xf32, #tpu.memory_space<vmem>>, vector<1x128xf32>
    %20 = vector.broadcast %19 : vector<1x128xf32> to vector<8x128xf32>
    %21 = arith.addf %18, %20 : vector<8x128xf32>
    %22 = math.tanh %21 : vector<8x128xf32>
    %23 = arith.truncf %22 : vector<8x128xf32> to vector<8x128xbf16>
    %c0_17 = arith.constant 0 : index
    %c0_18 = arith.constant 0 : index
    %24 = vector.load %arg8[%c0_17, %c0_18] : memref<128x128xbf16, #tpu.memory_space<vmem>>, vector<128x128xbf16>
    %cst_19 = arith.constant dense<0.000000e+00> : vector<8x128xf32>
    %25 = tpu.matmul %23, %24, %cst_19 {dimension_numbers = #tpu.dot_dimension_numbers<[1], [0], [0], [1], [0, 0, 1, 1], [], []>} : vector<8x128xbf16>, vector<128x128xbf16>, vector<8x128xf32> -> vector<8x128xf32>
    %c0_20 = arith.constant 0 : index
    %c0_21 = arith.constant 0 : index
    %26 = vector.load %arg9[%c0_20, %c0_21] : memref<1x128xf32, #tpu.memory_space<vmem>>, vector<1x128xf32>
    %27 = vector.broadcast %26 : vector<1x128xf32> to vector<8x128xf32>
    %28 = arith.addf %25, %27 : vector<8x128xf32>
    %cst_22 = arith.constant 0.000000e+00 : f32
    %29 = vector.broadcast %cst_22 : f32 to vector<8x128xf32>
    %30 = arith.cmpf ogt, %28, %29 : vector<8x128xf32>
    %cst_23 = arith.constant 1.000000e-01 : f32
    %31 = vector.broadcast %cst_23 : f32 to vector<8x128xf32>
    %32 = arith.mulf %31, %28 : vector<8x128xf32>
    %33 = arith.select %30, %28, %32 : vector<8x128xi1>, vector<8x128xf32>
    %34 = arith.truncf %33 : vector<8x128xf32> to vector<8x128xbf16>
    %c0_24 = arith.constant 0 : index
    %c0_25 = arith.constant 0 : index
    %35 = vector.load %arg10[%c0_24, %c0_25] : memref<128x128xbf16, #tpu.memory_space<vmem>>, vector<128x128xbf16>
    %cst_26 = arith.constant dense<0.000000e+00> : vector<8x128xf32>
    %36 = tpu.matmul %34, %35, %cst_26 {dimension_numbers = #tpu.dot_dimension_numbers<[1], [0], [0], [1], [0, 0, 1, 1], [], []>} : vector<8x128xbf16>, vector<128x128xbf16>, vector<8x128xf32> -> vector<8x128xf32>
    %c0_27 = arith.constant 0 : index
    %c0_28 = arith.constant 0 : index
    %37 = vector.load %arg11[%c0_27, %c0_28] : memref<1x128xf32, #tpu.memory_space<vmem>>, vector<1x128xf32>
    %38 = vector.broadcast %37 : vector<1x128xf32> to vector<8x128xf32>
    %39 = arith.addf %36, %38 : vector<8x128xf32>
    %cst_29 = arith.constant dense<0xFF800000> : vector<8xf32>
    %40 = vector.multi_reduction <maximumf>, %39, %cst_29 [1] : vector<8x128xf32> to vector<8xf32>
    %41 = vector.shape_cast %40 : vector<8xf32> to vector<8x1xf32>
    %42 = vector.broadcast %41 : vector<8x1xf32> to vector<8x128xf32>
    %43 = arith.subf %39, %42 : vector<8x128xf32>
    %44 = math.exp %43 : vector<8x128xf32>
    %cst_30 = arith.constant dense<0.000000e+00> : vector<8xf32>
    %45 = vector.multi_reduction <add>, %44, %cst_30 [1] : vector<8x128xf32> to vector<8xf32>
    %46 = vector.shape_cast %45 : vector<8xf32> to vector<8x1xf32>
    %47 = tpu.reciprocal %46 {approx = true} : vector<8x1xf32> -> vector<8x1xf32>
    %48 = vector.broadcast %47 : vector<8x1xf32> to vector<8x128xf32>
    %49 = arith.mulf %44, %48 : vector<8x128xf32>
    %c0_31 = arith.constant 0 : index
    %c0_32 = arith.constant 0 : index
    %50 = vector.load %arg12[%c0_31, %c0_32] : memref<8x128xf32, #tpu.memory_space<vmem>>, vector<8x128xf32>
    tpu.vector_store %arg12[%c0_31, %c0_32], %49 {strides = array<i32>} : memref<8x128xf32, #tpu.memory_space<vmem>>, vector<8x128xf32>,
    return
  }
  func.func @transform_0(%arg0: i32) -> (i32, i32) {
    %c0_i32 = arith.constant 0 : i32
    %c0_i32_0 = arith.constant 0 : i32
    return %arg0, %c0_i32 : i32, i32
  }
  func.func @transform_1(%arg0: i32) -> (i32, i32) {
    %c0_i32 = arith.constant 0 : i32
    %c0_i32_0 = arith.constant 0 : i32
    %c0_i32_1 = arith.constant 0 : i32
    return %c0_i32, %c0_i32_0 : i32, i32
  }
  func.func @transform_2(%arg0: i32) -> (i32, i32) {
    %c0_i32 = arith.constant 0 : i32
    %c0_i32_0 = arith.constant 0 : i32
    %c0_i32_1 = arith.constant 0 : i32
    return %c0_i32, %c0_i32_0 : i32, i32
  }
  func.func @transform_3(%arg0: i32) -> (i32, i32) {
    %c0_i32 = arith.constant 0 : i32
    %c0_i32_0 = arith.constant 0 : i32
    %c0_i32_1 = arith.constant 0 : i32
    return %c0_i32, %c0_i32_0 : i32, i32
  }
  func.func @transform_4(%arg0: i32) -> (i32, i32) {
    %c0_i32 = arith.constant 0 : i32
    %c0_i32_0 = arith.constant 0 : i32
    %c0_i32_1 = arith.constant 0 : i32
    return %c0_i32, %c0_i32_0 : i32, i32
  }
  func.func @transform_5(%arg0: i32) -> (i32, i32) {
    %c0_i32 = arith.constant 0 : i32
    %c0_i32_0 = arith.constant 0 : i32
    %c0_i32_1 = arith.constant 0 : i32
    return %c0_i32, %c0_i32_0 : i32, i32
  }
  func.func @transform_6(%arg0: i32) -> (i32, i32) {
    %c0_i32 = arith.constant 0 : i32
    %c0_i32_0 = arith.constant 0 : i32
    %c0_i32_1 = arith.constant 0 : i32
    return %c0_i32, %c0_i32_0 : i32, i32
  }
  func.func @transform_7(%arg0: i32) -> (i32, i32) {
    %c0_i32 = arith.constant 0 : i32
    %c0_i32_0 = arith.constant 0 : i32
    %c0_i32_1 = arith.constant 0 : i32
    return %c0_i32, %c0_i32_0 : i32, i32
  }
  func.func @transform_8(%arg0: i32) -> (i32, i32) {
    %c0_i32 = arith.constant 0 : i32
    %c0_i32_0 = arith.constant 0 : i32
    %c0_i32_1 = arith.constant 0 : i32
    return %c0_i32, %c0_i32_0 : i32, i32
  }
  func.func @transform_9(%arg0: i32) -> (i32, i32) {
    %c0_i32 = arith.constant 0 : i32
    %c0_i32_0 = arith.constant 0 : i32
    %c0_i32_1 = arith.constant 0 : i32
    return %c0_i32, %c0_i32_0 : i32, i32
  }
  func.func @transform_10(%arg0: i32) -> (i32, i32) {
    %c0_i32 = arith.constant 0 : i32
    %c0_i32_0 = arith.constant 0 : i32
    %c0_i32_1 = arith.constant 0 : i32
    return %c0_i32, %c0_i32_0 : i32, i32
  }
  func.func @transform_11(%arg0: i32) -> (i32, i32) {
    %c0_i32 = arith.constant 0 : i32
    %c0_i32_0 = arith.constant 0 : i32
    return %arg0, %c0_i32 : i32, i32
  }
}

</mosaic_0001>

<bundles_post_ra>
// kernel: tpu_custom_call.1
= control target key start
LH: loop header
LB: loop body
LE: loop exit
PB: predicated region body
PF: predicated region fallthrough
CT: control target
= control target key end

     0   :  { %16 = vsyncpa [#allocation3], 0  ;;  %s4465_s0 = inlined_call_operand.hbm [shape: bf16[8,784], index: 0, kind: input, shape index: {}]   ;;  %s4466_s1 = inlined_call_operand.hbm [shape: bf16[784,512], index: 1, kind: input, shape index: {}]   ;;  %s4467_s2 = inlined_call_operand.hbm [shape: f32[1,512], index: 2, kind: input, shape index: {}]   ;;  %s4468_s3 = inlined_call_operand.hbm [shape: bf16[512,256], index: 3, kind: input, shape index: {}]   ;;  %s4469_s4 = inlined_call_operand.vmem [shape: f32[1,256], index: 4, kind: input, shape index: {}]   ;;  %s4470_s5 = inlined_call_operand.hbm [shape: bf16[256,128], index: 5, kind: input, shape index: {}]   ;;  %s4471_s6 = inlined_call_operand.vmem [shape: f32[1,128], index: 6, kind: input, shape index: {}]   ;;  %s4472_s7 = inlined_call_operand.hbm [shape: bf16[128,128], index: 7, kind: input, shape index: {}]   ;;  %s4473_s8 = inlined_call_operand.vmem [shape: f32[1,128], index: 8, kind: input, shape index: {}]   ;;  %s4474_s9 = inlined_call_operand.hbm [shape: bf16[128,128], index: 9, kind: input, shape index: {}]   ;;  %s4475_s10 = inlined_call_operand.vmem [shape: f32[1,128], index: 10, kind: input, shape index: {}]   ;;  %s4476_s11 = inlined_call_operand.hbm [shape: f32[8,128], index: 11, kind: output, shape index: {}]  }
   0x1   :  { %17 = vsyncpa [#allocation6], 0 }
   0x2   :  { %18 = vsyncpa [#allocation9], 0 }
   0x3   :  { %19 = vsyncpa [#allocation12], 0  ;;  %s36_s19 = sshll.u32 %s4466_s1, 4  ;;  %s37_s19 = int_to_ptr.hbm [resolvable:$true] %s36_s19 }
   0x4   :  { %20 = vsyncpa [#allocation4], 0  ;;  %s4278_s20 = smov [#allocation5]   ;;  %s60_s24 = sshll.u32 %s4468_s3, 4  ;;  %s61_s24 = int_to_ptr.hbm [resolvable:$true] %s60_s24 }
   0x5   :  { %s38_s21 = sshll.u32 %s4278_s20, 4  ;;  %s4279_s25 = smov 256   ;;  %s39_s21 = int_to_ptr.vmem [resolvable:$true] %s38_s21 }
   0x6   :  { %s4280_s26 = smov 16   ;;  %s4281_s27 = smov [#allocation8]  }
   0x7   :  { %44 = dma.hbm_to_vmem [thread:$0]  %s37_s19, 25088, %s39_s21, [#allocation6], %s4279_s25, %s4279_s25, %s4280_s26  }
   0x8   :  { %s62_s28 = sshll.u32 %s4281_s27, 4  ;;  %s4282_s29 = smov 128   ;;  %s63_s28 = int_to_ptr.vmem [resolvable:$true] %s62_s28 }
   0x9   :  { %s4283_s30 = smov 8   ;;  %s90_s13 = sshll.u32 %s4472_s7, 4  ;;  %s91_s13 = int_to_ptr.hbm [resolvable:$true] %s90_s13 }
   0xa   :  { %68 = dma.hbm_to_vmem [thread:$0]  %s61_s24, 8192, %s63_s28, [#allocation9], %s4282_s29, %s4282_s29, %s4283_s30  }
   0xb   :  { %s4284_s14 = smov [#allocation11]   ;;  %s26_s17 = sshll.u32 %s4465_s0, 4  ;;  %s27_s17 = int_to_ptr.hbm [resolvable:$true] %s26_s17 }
   0xc   :  { %s92_s15 = sshll.u32 %s4284_s14, 4  ;;  %s4285_s18 = smov 64   ;;  %s93_s15 = int_to_ptr.vmem [resolvable:$true] %s92_s15 }
   0xd   :  { %s4286_s19 = smov 4   ;;  %s4287_s20 = smov [#allocation2]  }
   0xe   :  { %98 = dma.hbm_to_vmem [thread:$0]  %s91_s13, 1024, %s93_s15, [#allocation12], %s4285_s18, %s4285_s18, %s4286_s19  }
   0xf   :  { %s28_s21 = sshll.u32 %s4287_s20, 4  ;;  %s50_s24 = sshll.u32 %s4467_s2, 4  ;;  %s29_s21 = int_to_ptr.vmem [resolvable:$true] %s28_s21  ;;  %s51_s24 = int_to_ptr.hbm [resolvable:$true] %s50_s24 }
  0x10   :  { %31 = dma.hbm_to_vmem [thread:$0]  %s27_s17, 448, %s29_s21, [#allocation3]  }
  0x11   :  { %s75_s26 = sshll.u32 %s4470_s5, 4  ;;  %s4288_s27 = smov [#allocation7]   ;;  %s76_s26 = int_to_ptr.hbm [resolvable:$true] %s75_s26 }
  0x12   :  { %s52_s28 = sshll.u32 %s4288_s27, 4  ;;  %s4289_s0 = smov [#allocation10]   ;;  %s53_s28 = int_to_ptr.vmem [resolvable:$true] %s52_s28 }
  0x13   :  { %55 = dma.hbm_to_vmem [thread:$0]  %s51_s24, 64, %s53_s28, [#allocation6]  }
  0x14   :  { %s77_s29 = sshll.u32 %s4289_s0, 4  ;;  %s105_s12 = sshll.u32 %s4474_s9, 4  ;;  %s78_s29 = int_to_ptr.vmem [resolvable:$true] %s77_s29  ;;  %s106_s12 = int_to_ptr.hbm [resolvable:$true] %s105_s12 }
  0x15   :  { %83 = dma.hbm_to_vmem [thread:$0]  %s76_s26, 2048, %s78_s29, [#allocation9], %s4285_s18, %s4285_s18, %s4286_s19  }
  0x16   :  { %s4290_s2 = smov [#allocation13]  }
  0x17   :  { %s107_s13 = sshll.u32 %s4290_s2, 4  ;;  %s108_s13 = int_to_ptr.vmem [resolvable:$true] %s107_s13 }
  0x18   :  { %113 = dma.hbm_to_vmem [thread:$0]  %s106_s12, 1024, %s108_s13, [#allocation12], %s4285_s18, %s4285_s18, %s4286_s19  }
  0x19   :  { %4268 = dma.done.wait [#allocation3], 448  }
  0x1a   :  { %4269 = vsyncadd [#allocation3], 4294966848 }
  0x1b   :  { %4270 = dma.done.wait [#allocation6], 25152  }
  0x1c   :  { %4271 = vsyncadd [#allocation6], 4294942144 }
  0x1d   :  { %4272 = dma.done.wait [#allocation9], 10240  }
  0x1e   :  { %4273 = vsyncadd [#allocation9], 4294957056 }
  0x1f   :  { %4274 = dma.done.wait [#allocation12], 2048  }
  0x20   :  { %4275 = vsyncadd [#allocation12], 4294965248  ;;  %v2703_v0 = vld [vmem:[#allocation5 + $0xe0] sm:$0xf]  ;;  %v3791_v1 = vld [vmem:[#allocation5 + $0xec] sm:$0xf0] }
  0x21   :  { %v2831_v2 = vld [vmem:[#allocation5 + $0x1e0] sm:$0xf]  ;;  %v2704_v3 = vor.u32 %v3791_v1, %v2703_v0  ;;  %v3823_v4 = vld [vmem:[#allocation5 + $0x1ec] sm:$0xf0]  ;;  %vm1359_vm0 = vcmask 130048   ;;  %s2576_s20 = sshll.u32 %s4476_s11, 4  ;;  %s2577_s20 = int_to_ptr.hbm [resolvable:$true] %s2576_s20 }
  0x22   :  { %v2959_v5 = vld [vmem:[#allocation5 + $0x2e0] sm:$0xf]  ;;  %v3855_v6 = vld [vmem:[#allocation5 + $0x2ec] sm:$0xf0]  ;;  %v2832_v7 = vor.u32 %v3823_v4, %v2831_v2 }
  0x23   :  { %v2960_v8 = vor.u32 %v3855_v6, %v2959_v5  ;;  %v3087_v9 = vld [vmem:[#allocation5 + $0x3e0] sm:$0xf]  ;;  %v3887_v10 = vld [vmem:[#allocation5 + $0x3ec] sm:$0xf0]  ;;  %1363 = vmatpush.bf16.msra.mxu0 %v2704_v3 }
  0x24   :  { %v2687_v11 = vld [vmem:[#allocation5 + $0xc0] sm:$0xf]  ;;  %v3088_v12 = vor.u32 %v3887_v10, %v3087_v9  ;;  %v3787_v13 = vld [vmem:[#allocation5 + $0xcc] sm:$0xf0]  ;;  %1376 = vmatpush.bf16.msra.mxu1 %v2832_v7 }
  0x25   :  { %v2815_v14 = vld [vmem:[#allocation5 + $0x1c0] sm:$0xf]  ;;  %v3819_v15 = vld [vmem:[#allocation5 + $0x1cc] sm:$0xf0]  ;;  %1389 = vmatpush.bf16.msra.mxu2 %v2960_v8  ;;  %v2688_v16 = vor.u32 %v3787_v13, %v2687_v11 }
  0x26   :  { %v2816_v17 = vor.u32 %v3819_v15, %v2815_v14  ;;  %v2943_v18 = vld [vmem:[#allocation5 + $0x2c0] sm:$0xf]  ;;  %v3851_v19 = vld [vmem:[#allocation5 + $0x2cc] sm:$0xf0]  ;;  %1402 = vmatpush.bf16.msra.mxu3 %v3088_v12 }
  0x27   :  { %v3071_v20 = vld [vmem:[#allocation5 + $0x3c0] sm:$0xf]  ;;  %v2944_v21 = vor.u32 %v3851_v19, %v2943_v18  ;;  %v3883_v22 = vld [vmem:[#allocation5 + $0x3cc] sm:$0xf0]  ;;  %1364 = vmatpush.bf16.msra.mxu0 %v2688_v16 }
  0x28   :  { %v2671_v23 = vld [vmem:[#allocation5 + $0xa0] sm:$0xf]  ;;  %v3783_v24 = vld [vmem:[#allocation5 + $0xac] sm:$0xf0]  ;;  %v3072_v25 = vor.u32 %v3883_v22, %v3071_v20  ;;  %1377 = vmatpush.bf16.msra.mxu1 %v2816_v17 }
  0x29   :  { %v2799_v26 = vld [vmem:[#allocation5 + $0x1a0] sm:$0xf]  ;;  %v3815_v27 = vld [vmem:[#allocation5 + $0x1ac] sm:$0xf0]  ;;  %v2672_v29 = vor.u32 %v3783_v24, %v2671_v23  ;;  %1390 = vmatpush.bf16.msra.mxu2 %v2944_v21 }
  0x2a   :  { %v2927_v28 = vld [vmem:[#allocation5 + $0x2a0] sm:$0xf]  ;;  %v3847_v30 = vld [vmem:[#allocation5 + $0x2ac] sm:$0xf0]  ;;  %v2800_v33 = vor.u32 %v3815_v27, %v2799_v26  ;;  %1403 = vmatpush.bf16.msra.mxu3 %v3072_v25 }
  0x2b   :  { %v3055_v31 = vld [vmem:[#allocation5 + $0x3a0] sm:$0xf]  ;;  %v3879_v32 = vld [vmem:[#allocation5 + $0x3ac] sm:$0xf0]  ;;  %v2928_v34 = vor.u32 %v3847_v30, %v2927_v28  ;;  %1365 = vmatpush.bf16.msra.mxu0 %v2672_v29 }
  0x2c   :  { %v2655_v35 = vld [vmem:[#allocation5 + $0x80] sm:$0xf]  ;;  %v3779_v36 = vld [vmem:[#allocation5 + $0x8c] sm:$0xf0]  ;;  %v3056_v38 = vor.u32 %v3879_v32, %v3055_v31  ;;  %1378 = vmatpush.bf16.msra.mxu1 %v2800_v33 }
  0x2d   :  { %v2783_v37 = vld [vmem:[#allocation5 + $0x180] sm:$0xf]  ;;  %v3811_v39 = vld [vmem:[#allocation5 + $0x18c] sm:$0xf0]  ;;  %v2656_v44 = vor.u32 %v3779_v36, %v2655_v35  ;;  %1391 = vmatpush.bf16.msra.mxu2 %v2928_v34  ;;  %v3789_v34 = vld [vmem:[#allocation5 + $0xe4] sm:$0xf] }
  0x2e   :  { %v2911_v40 = vld [vmem:[#allocation5 + $0x280] sm:$0xf]  ;;  %v3843_v41 = vld [vmem:[#allocation5 + $0x28c] sm:$0xf0]  ;;  %v2784_v45 = vor.u32 %v3811_v39, %v2783_v37  ;;  %1404 = vmatpush.bf16.msra.mxu3 %v3056_v38  ;;  %v2705_v35 = vld [vmem:[#allocation5 + $0xf0] sm:$0xf0] }
  0x2f   :  { %v3039_v42 = vld [vmem:[#allocation5 + $0x380] sm:$0xf]  ;;  %v3875_v43 = vld [vmem:[#allocation5 + $0x38c] sm:$0xf0]  ;;  %v2912_v46 = vor.u32 %v3843_v41, %v2911_v40  ;;  %1366 = vmatpush.bf16.msra.mxu0 %v2656_v44  ;;  %v145_v37 = vld [vmem:[#allocation2] sm:$0xff] }
  0x30   :  { %v2639_v47 = vld [vmem:[#allocation5 + $0x60] sm:$0xf]  ;;  %v3775_v48 = vld [vmem:[#allocation5 + $0x6c] sm:$0xf0]  ;;  %v3040_v50 = vor.u32 %v3875_v43, %v3039_v42  ;;  %1379 = vmatpush.bf16.msra.mxu1 %v2784_v45  ;;  %v359_v41 = vunpack.c.l.b16 %v145_v37 }
  0x31   :  { %v2767_v49 = vld [vmem:[#allocation5 + $0x160] sm:$0xf]  ;;  %v3807_v51 = vld [vmem:[#allocation5 + $0x16c] sm:$0xf0]  ;;  %v2640_v56 = vor.u32 %v3775_v48, %v2639_v47  ;;  %1392 = vmatpush.bf16.msra.mxu2 %v2912_v46  ;;  %v3821_v46 = vld [vmem:[#allocation5 + $0x1e4] sm:$0xf] }
  0x32   :  { %v2895_v52 = vld [vmem:[#allocation5 + $0x260] sm:$0xf]  ;;  %v3839_v53 = vld [vmem:[#allocation5 + $0x26c] sm:$0xf0]  ;;  %v2768_v57 = vor.u32 %v3807_v51, %v2767_v49  ;;  %1405 = vmatpush.bf16.msra.mxu3 %v3040_v50  ;;  %v2833_v47 = vld [vmem:[#allocation5 + $0x1f0] sm:$0xf0]  ;;  %v2708_v49 = vor.u32 %v3789_v34, %v2705_v35 }
  0x33   :  { %v3023_v54 = vld [vmem:[#allocation5 + $0x360] sm:$0xf]  ;;  %v3871_v55 = vld [vmem:[#allocation5 + $0x36c] sm:$0xf0]  ;;  %v2896_v58 = vor.u32 %v3839_v53, %v2895_v52  ;;  %1367 = vmatpush.bf16.msra.mxu0 %v2640_v56  ;;  %v2689_v56 = vld [vmem:[#allocation5 + $0xd0] sm:$0xf0] }
  0x34   :  { %v2623_v59 = vld [vmem:[#allocation5 + $0x40] sm:$0xf]  ;;  %v3771_v60 = vld [vmem:[#allocation5 + $0x4c] sm:$0xf0]  ;;  %v3024_v62 = vor.u32 %v3871_v55, %v3023_v54  ;;  %1380 = vmatpush.bf16.msra.mxu1 %v2768_v57  ;;  %v3785_v55 = vld [vmem:[#allocation5 + $0xc4] sm:$0xf]  ;;  %v4375_v57 = vpack.c.b16 %v359_v41, %v359_v41 }
  0x35   :  { %v2751_v61 = vld [vmem:[#allocation5 + $0x140] sm:$0xf]  ;;  %v3803_v63 = vld [vmem:[#allocation5 + $0x14c] sm:$0xf0]  ;;  %v2624_v4 = vor.u32 %v3771_v60, %v2623_v59  ;;  %1393 = vmatpush.bf16.msra.mxu2 %v2896_v58  ;;  %v360_v58 = vunpack.c.h.b16 %v145_v37  ;;  %v2641_v34 = vld [vmem:[#allocation5 + $0x70] sm:$0xf0] }
  0x36   :  { %v2879_v0 = vld [vmem:[#allocation5 + $0x240] sm:$0xf]  ;;  %v3835_v1 = vld [vmem:[#allocation5 + $0x24c] sm:$0xf0]  ;;  %v2752_v5 = vor.u32 %v3803_v63, %v2751_v61  ;;  %1406 = vmatpush.bf16.msra.mxu3 %v3024_v62  ;;  %v2836_v61 = vor.u32 %v3821_v46, %v2833_v47  ;;  %v3817_v63 = vld [vmem:[#allocation5 + $0x1c4] sm:$0xf] }
  0x37   :  { %v3007_v2 = vld [vmem:[#allocation5 + $0x340] sm:$0xf]  ;;  %v3867_v3 = vld [vmem:[#allocation5 + $0x34c] sm:$0xf0]  ;;  %v2880_v6 = vor.u32 %v3835_v1, %v2879_v0  ;;  %1368 = vmatpush.bf16.msra.mxu0 %v2624_v4  ;;  %v2817_v0 = vld [vmem:[#allocation5 + $0x1d0] sm:$0xf0] }
  0x38   :  { %v2607_v7 = vld [vmem:[#allocation5 + $0x20] sm:$0xf]  ;;  %v3767_v8 = vld [vmem:[#allocation5 + $0x2c] sm:$0xf0]  ;;  %v3008_v10 = vor.u32 %v3867_v3, %v3007_v2  ;;  %1381 = vmatpush.bf16.msra.mxu1 %v2752_v5  ;;  %v2692_v2 = vor.u32 %v3785_v55, %v2689_v56  ;;  %v3769_v46 = vld [vmem:[#allocation5 + $0x44] sm:$0xf] }
  0x39   :  { %v2735_v9 = vld [vmem:[#allocation5 + $0x120] sm:$0xf]  ;;  %v3799_v11 = vld [vmem:[#allocation5 + $0x12c] sm:$0xf0]  ;;  %v2608_v17 = vor.u32 %v3767_v8, %v2607_v7  ;;  %1394 = vmatpush.bf16.msra.mxu2 %v2880_v6  ;;  %v3781_v7 = vld [vmem:[#allocation5 + $0xa4] sm:$0xf] }
  0x3a   :  { %v2863_v12 = vld [vmem:[#allocation5 + $0x220] sm:$0xf]  ;;  %v3831_v13 = vld [vmem:[#allocation5 + $0x22c] sm:$0xf0]  ;;  %v2736_v21 = vor.u32 %v3799_v11, %v2735_v9  ;;  %1407 = vmatpush.bf16.msra.mxu3 %v3008_v10  ;;  %v2673_v8 = vld [vmem:[#allocation5 + $0xb0] sm:$0xf0]  ;;  %v4381_v9 = vpack.c.b16 %v360_v58, %v360_v58  ;;  %v2820_v10 = vor.u32 %v3817_v63, %v2817_v0 }
  0x3b   :  { %v2991_v14 = vld [vmem:[#allocation5 + $0x320] sm:$0xf]  ;;  %v3863_v15 = vld [vmem:[#allocation5 + $0x32c] sm:$0xf0]  ;;  %v2864_v22 = vor.u32 %v3831_v13, %v2863_v12  ;;  %1369 = vmatpush.bf16.msra.mxu0 %v2608_v17  ;;  %v3813_v12 = vld [vmem:[#allocation5 + $0x1a4] sm:$0xf] }
  0x3c   :  { %v2591_v16 = vld [vmem:[#allocation5] sm:$0xf]  ;;  %v3763_v18 = vld [vmem:[#allocation5 + $0xc] sm:$0xf0]  ;;  %v2992_v26 = vor.u32 %v3863_v15, %v2991_v14  ;;  %1382 = vmatpush.bf16.msra.mxu1 %v2736_v21  ;;  %v2801_v13 = vld [vmem:[#allocation5 + $0x1b0] sm:$0xf0]  ;;  %v2676_v15 = vor.u32 %v3781_v7, %v2673_v8 }
  0x3d   :  { %v2719_v19 = vld [vmem:[#allocation5 + $0x100] sm:$0xf]  ;;  %v3795_v20 = vld [vmem:[#allocation5 + $0x10c] sm:$0xf0]  ;;  %v2592_v33 = vor.u32 %v3763_v18, %v2591_v16  ;;  %1395 = vmatpush.bf16.msra.mxu2 %v2864_v22  ;;  %v2657_v21 = vld [vmem:[#allocation5 + $0x90] sm:$0xf0] }
  0x3e   :  { %v2847_v23 = vld [vmem:[#allocation5 + $0x200] sm:$0xf]  ;;  %v3827_v24 = vld [vmem:[#allocation5 + $0x20c] sm:$0xf0]  ;;  %v2720_v38 = vor.u32 %v3795_v20, %v2719_v19  ;;  %1408 = vmatpush.bf16.msra.mxu3 %v2992_v26  ;;  %v3777_v20 = vld [vmem:[#allocation5 + $0x84] sm:$0xf] }
  0x3f   :  { %v146_v25 = vld [vmem:[#allocation2 + $0x8] sm:$0xff]  ;;  %v2975_v27 = vld [vmem:[#allocation5 + $0x300] sm:$0xf]  ;;  %v2848_v39 = vor.u32 %v3827_v24, %v2847_v23  ;;  %1370 = vmatpush.bf16.msra.mxu0 %v2592_v33  ;;  %v148_v22 = vld [vmem:[#allocation2 + $0x18] sm:$0xf]  ;;  %v2804_v23 = vor.u32 %v3813_v12, %v2801_v13 }
  0x40   :  { %v3859_v28 = vld [vmem:[#allocation5 + $0x30c] sm:$0xf0]  ;;  %v3215_v29 = vld [vmem:[#allocation5 + $0x4e0] sm:$0xf]  ;;  %v361_v36 = vunpack.c.l.b16 %v146_v25  ;;  %v362_v42 = vunpack.c.h.b16 %v146_v25  ;;  %1383 = vmatpush.bf16.msra.mxu1 %v2720_v38  ;;  %v3809_v25 = vld [vmem:[#allocation5 + $0x184] sm:$0xf]  ;;  %v365_v35 = vunpack.c.l.b16 %v148_v22 }
  0x41   :  { %v3919_v30 = vld [vmem:[#allocation5 + $0x4ec] sm:$0xf0]  ;;  %v3343_v31 = vld [vmem:[#allocation5 + $0x5e0] sm:$0xf]  ;;  %v2976_v43 = vor.u32 %v3859_v28, %v2975_v27  ;;  %1396 = vmatpush.bf16.msra.mxu2 %v2848_v39  ;;  %v2785_v26 = vld [vmem:[#allocation5 + $0x190] sm:$0xf0]  ;;  %v2660_v28 = vor.u32 %v3777_v20, %v2657_v21 }
  0x42   :  { %v3951_v32 = vld [vmem:[#allocation5 + $0x5ec] sm:$0xf0]  ;;  %v3359_v40 = vld [vmem:[#allocation5 + $0x600] sm:$0xf]  ;;  %v3216_v44 = vor.u32 %v3919_v30, %v3215_v29  ;;  %v4373_v53 = vpack.c.b16 %v361_v36, %v361_v36  ;;  %v4377_v60 = vpack.c.b16 %v362_v42, %v362_v42  ;;  %1371 = vmatmul.bf16.vlgmr.msra.gmra.mxu0 %v4375_v57  ;;  %v3773_v33 = vld [vmem:[#allocation5 + $0x64] sm:$0xf]  ;;  %v2788_v36 = vor.u32 %v3809_v25, %v2785_v26 }
  0x43   :  { %v3955_v45 = vld [vmem:[#allocation5 + $0x60c] sm:$0xf0]  ;;  %v3344_v48 = vor.u32 %v3951_v32, %v3343_v31  ;;  %v3199_v50 = vld [vmem:[#allocation5 + $0x4c0] sm:$0xf]  ;;  %1409 = vmatpush.bf16.msra.mxu3 %v2976_v43  ;;  %1384 = vmatmul.bf16.vlgmr.msra.gmra.mxu1 %v4381_v9  ;;  %v3805_v38 = vld [vmem:[#allocation5 + $0x164] sm:$0xf]  ;;  %v2644_v41 = vor.u32 %v3773_v33, %v2641_v34 }
  0x44   :  { %v3915_v51 = vld [vmem:[#allocation5 + $0x4cc] sm:$0xf0]  ;;  %v3327_v52 = vld [vmem:[#allocation5 + $0x5c0] sm:$0xf]  ;;  %v3360_v59 = vor.u32 %v3955_v45, %v3359_v40  ;;  %1415 = vmatpush.bf16.msrb.mxu0 %v3216_v44  ;;  %1397 = vmatmul.bf16.vlgmr.msra.gmra.mxu2 %v4373_v53  ;;  %v2769_v39 = vld [vmem:[#allocation5 + $0x170] sm:$0xf0] }
  0x45   :  { %v3947_v54 = vld [vmem:[#allocation5 + $0x5cc] sm:$0xf0]  ;;  %v3200_v62 = vor.u32 %v3915_v51, %v3199_v50  ;;  %1428 = vmatpush.bf16.msrb.mxu1 %v3344_v48  ;;  %v3183_v3 = vld [vmem:[#allocation5 + $0x4a0] sm:$0xf]  ;;  %v2625_v47 = vld [vmem:[#allocation5 + $0x50] sm:$0xf0]  ;;  %v4385_v48 = vpack.c.b16 %v365_v35, %v365_v35 }
  0x46   :  { %v3328_v1 = vor.u32 %v3947_v54, %v3327_v52  ;;  %v3911_v4 = vld [vmem:[#allocation5 + $0x4ac] sm:$0xf0]  ;;  %v3311_v5 = vld [vmem:[#allocation5 + $0x5a0] sm:$0xf]  ;;  %1448 = vmatpush.bf16.msrb.mxu2 %v3360_v59  ;;  %1410 = vmatmul.bf16.vlgmr.msra.gmra.mxu3 %v4377_v60  ;;  %v3801_v51 = vld [vmem:[#allocation5 + $0x144] sm:$0xf]  ;;  %v2628_v55 = vor.u32 %v3769_v46, %v2625_v47 }
  0x47   :  { %1454 = vmatpush.bf16.msrb.mxu3 %v2708_v49  ;;  %v3943_v6 = vld [vmem:[#allocation5 + $0x5ac] sm:$0xf0]  ;;  %v3184_v11 = vor.u32 %v3911_v4, %v3183_v3  ;;  %v3167_v16 = vld [vmem:[#allocation5 + $0x480] sm:$0xf]  ;;  %v2772_v49 = vor.u32 %v3805_v38, %v2769_v39  ;;  %v2753_v52 = vld [vmem:[#allocation5 + $0x150] sm:$0xf0] }
  0x48   :  { %1416 = vmatpush.bf16.msrb.mxu0 %v3200_v62  ;;  %v3312_v14 = vor.u32 %v3943_v6, %v3311_v5  ;;  %v3907_v17 = vld [vmem:[#allocation5 + $0x48c] sm:$0xf0]  ;;  %v3295_v18 = vld [vmem:[#allocation5 + $0x580] sm:$0xf]  ;;  %v3765_v62 = vld [vmem:[#allocation5 + $0x24] sm:$0xf] }
  0x49   :  { %1429 = vmatpush.bf16.msrb.mxu1 %v3328_v1  ;;  %v3939_v19 = vld [vmem:[#allocation5 + $0x58c] sm:$0xf0]  ;;  %v3168_v24 = vor.u32 %v3907_v17, %v3167_v16  ;;  %v3151_v29 = vld [vmem:[#allocation5 + $0x460] sm:$0xf]  ;;  %v2609_v63 = vld [vmem:[#allocation5 + $0x30] sm:$0xf0]  ;;  %v2756_v1 = vor.u32 %v3801_v51, %v2753_v52 }
  0x4a   :  { %1467 = vmatpush.bf16.msra.mxu2 %v2836_v61  ;;  %v3296_v27 = vor.u32 %v3939_v19, %v3295_v18  ;;  %v3903_v30 = vld [vmem:[#allocation5 + $0x46c] sm:$0xf0]  ;;  %v3279_v31 = vld [vmem:[#allocation5 + $0x560] sm:$0xf]  ;;  %v3797_v0 = vld [vmem:[#allocation5 + $0x124] sm:$0xf]  ;;  %v2612_v7 = vor.u32 %v3765_v62, %v2609_v63 }
  0x4b   :  { %1455 = vmatpush.bf16.msrb.mxu3 %v2692_v2  ;;  %v3935_v32 = vld [vmem:[#allocation5 + $0x56c] sm:$0xf0]  ;;  %v3152_v37 = vor.u32 %v3903_v30, %v3151_v29  ;;  %v3135_v42 = vld [vmem:[#allocation5 + $0x440] sm:$0xf]  ;;  %v2737_v3 = vld [vmem:[#allocation5 + $0x130] sm:$0xf0] }
  0x4c   :  { %1417 = vmatpush.bf16.msrb.mxu0 %v3184_v11  ;;  %v3280_v40 = vor.u32 %v3935_v32, %v3279_v31  ;;  %v3899_v43 = vld [vmem:[#allocation5 + $0x44c] sm:$0xf0]  ;;  %v3263_v44 = vld [vmem:[#allocation5 + $0x540] sm:$0xf]  ;;  %v147_v5 = vld [vmem:[#allocation2 + $0x10] sm:$0xff]  ;;  %v2740_v19 = vor.u32 %v3797_v0, %v2737_v3 }
  0x4d   :  { %1430 = vmatpush.bf16.msrb.mxu1 %v3312_v14  ;;  %v3931_v45 = vld [vmem:[#allocation5 + $0x54c] sm:$0xf0]  ;;  %v3136_v50 = vor.u32 %v3899_v43, %v3135_v42  ;;  %v3119_v56 = vld [vmem:[#allocation5 + $0x420] sm:$0xf]  ;;  %v3761_v12 = vld [vmem:[#allocation5 + $0x4] sm:$0xf]  ;;  %v363_v18 = vunpack.c.l.b16 %v147_v5 }
  0x4e   :  { %1468 = vmatpush.bf16.msra.mxu2 %v2820_v10  ;;  %v3264_v54 = vor.u32 %v3931_v45, %v3263_v44  ;;  %v3895_v58 = vld [vmem:[#allocation5 + $0x42c] sm:$0xf0]  ;;  %v3247_v59 = vld [vmem:[#allocation5 + $0x520] sm:$0xf]  ;;  %v2593_v13 = vld [vmem:[#allocation5 + $0x10] sm:$0xf0] }
  0x4f   :  { %1456 = vmatpush.bf16.msrb.mxu3 %v2676_v15  ;;  %v3927_v61 = vld [vmem:[#allocation5 + $0x52c] sm:$0xf0]  ;;  %v3120_v2 = vor.u32 %v3895_v58, %v3119_v56  ;;  %v3103_v4 = vld [vmem:[#allocation5 + $0x400] sm:$0xf]  ;;  %v3853_v14 = vld [vmem:[#allocation5 + $0x2e4] sm:$0xf]  ;;  %v2596_v25 = vor.u32 %v3761_v12, %v2593_v13  ;;  %v4389_v34 = vpack.c.b16 %v363_v18, %v363_v18 }
  0x50   :  { %1418 = vmatpush.bf16.msrb.mxu0 %v3168_v24  ;;  %v3248_v6 = vor.u32 %v3927_v61, %v3247_v59  ;;  %v3891_v8 = vld [vmem:[#allocation5 + $0x40c] sm:$0xf0]  ;;  %v3231_v10 = vld [vmem:[#allocation5 + $0x500] sm:$0xf]  ;;  %v2961_v15 = vld [vmem:[#allocation5 + $0x2f0] sm:$0xf0] }
  0x51   :  { %1431 = vmatpush.bf16.msrb.mxu1 %v3296_v27  ;;  %v3923_v11 = vld [vmem:[#allocation5 + $0x50c] sm:$0xf0]  ;;  %v3885_v16 = vld [vmem:[#allocation5 + $0x3e4] sm:$0xf]  ;;  %v3089_v17 = vld [vmem:[#allocation5 + $0x3f0] sm:$0xf0]  ;;  %v3104_v20 = vor.u32 %v3891_v8, %v3103_v4 }
  0x52   :  { %1469 = vmatpush.bf16.msra.mxu2 %v2804_v23  ;;  %v3917_v21 = vld [vmem:[#allocation5 + $0x4e4] sm:$0xf]  ;;  %v3217_v22 = vld [vmem:[#allocation5 + $0x4f0] sm:$0xf0]  ;;  %v364_v23 = vunpack.c.h.b16 %v147_v5  ;;  %v3232_v24 = vor.u32 %v3923_v11, %v3231_v10  ;;  %v3092_v29 = vor.u32 %v3885_v16, %v3089_v17 }
  0x53   :  { %1457 = vmatpush.bf16.msrb.mxu3 %v2660_v28  ;;  %v3793_v26 = vld [vmem:[#allocation5 + $0x104] sm:$0xf]  ;;  %v2721_v27 = vld [vmem:[#allocation5 + $0x110] sm:$0xf0]  ;;  %v2964_v28 = vor.u32 %v3853_v14, %v2961_v15  ;;  %v3220_v33 = vor.u32 %v3917_v21, %v3217_v22 }
  0x54   :  { %1419 = vmatpush.bf16.msrb.mxu0 %v3152_v37  ;;  %3373 = vmatmul.msk.bf16.vlgmr.msrb.gmra.mxu2 %vm1359_vm0, %v4385_v48  ;;  %v3949_v30 = vld [vmem:[#allocation5 + $0x5e4] sm:$0xf]  ;;  %v3345_v31 = vld [vmem:[#allocation5 + $0x5f0] sm:$0xf0]  ;;  %v2724_v38 = vor.u32 %v3793_v26, %v2721_v27  ;;  %v4391_v39 = vpack.c.b16 %v364_v23, %v364_v23 }
  0x55   :  { %1432 = vmatpush.bf16.msrb.mxu1 %v3280_v40  ;;  %v3849_v32 = vld [vmem:[#allocation5 + $0x2c4] sm:$0xf]  ;;  %v2945_v35 = vld [vmem:[#allocation5 + $0x2d0] sm:$0xf0]  ;;  %v3348_v42 = vor.u32 %v3949_v30, %v3345_v31 }
  0x56   :  { %1470 = vmatpush.bf16.msra.mxu2 %v2788_v36  ;;  %v3881_v36 = vld [vmem:[#allocation5 + $0x3c4] sm:$0xf]  ;;  %v3073_v37 = vld [vmem:[#allocation5 + $0x3d0] sm:$0xf0]  ;;  %v2948_v43 = vor.u32 %v3849_v32, %v2945_v35 }
  0x57   :  { %1458 = vmatpush.bf16.msrb.mxu3 %v2644_v41  ;;  %v3913_v40 = vld [vmem:[#allocation5 + $0x4c4] sm:$0xf]  ;;  %v3201_v41 = vld [vmem:[#allocation5 + $0x4d0] sm:$0xf0]  ;;  %v3076_v44 = vor.u32 %v3881_v36, %v3073_v37 }
  0x58   :  { %1420 = vmatpush.bf16.msrb.mxu0 %v3136_v50  ;;  %v3945_v45 = vld [vmem:[#allocation5 + $0x5c4] sm:$0xf]  ;;  %v3329_v46 = vld [vmem:[#allocation5 + $0x5d0] sm:$0xf0] }
  0x59   :  { %1433 = vmatpush.bf16.msrb.mxu1 %v3264_v54  ;;  %v3845_v47 = vld [vmem:[#allocation5 + $0x2a4] sm:$0xf]  ;;  %v2929_v50 = vld [vmem:[#allocation5 + $0x2b0] sm:$0xf0]  ;;  %v3332_v56 = vor.u32 %v3945_v45, %v3329_v46 }
  0x5a   :  { %1471 = vmatpush.bf16.msra.mxu2 %v2772_v49  ;;  %v3204_v49 = vor.u32 %v3913_v40, %v3201_v41  ;;  %v3877_v51 = vld [vmem:[#allocation5 + $0x3a4] sm:$0xf]  ;;  %v3057_v52 = vld [vmem:[#allocation5 + $0x3b0] sm:$0xf0]  ;;  %v2932_v58 = vor.u32 %v3845_v47, %v2929_v50 }
  0x5b   :  { %1459 = vmatpush.bf16.msrb.mxu3 %v2628_v55  ;;  %v3909_v54 = vld [vmem:[#allocation5 + $0x4a4] sm:$0xf]  ;;  %v3185_v55 = vld [vmem:[#allocation5 + $0x4b0] sm:$0xf0]  ;;  %v3060_v59 = vor.u32 %v3877_v51, %v3057_v52 }
  0x5c   :  { %1421 = vmatpush.bf16.msrb.mxu0 %v3120_v2  ;;  %v3941_v61 = vld [vmem:[#allocation5 + $0x5a4] sm:$0xf]  ;;  %v3313_v62 = vld [vmem:[#allocation5 + $0x5b0] sm:$0xf0]  ;;  %v3188_v0 = vor.u32 %v3909_v54, %v3185_v55 }
  0x5d   :  { %1434 = vmatpush.bf16.msrb.mxu1 %v3248_v6  ;;  %v3841_v63 = vld [vmem:[#allocation5 + $0x284] sm:$0xf]  ;;  %v3041_v3 = vld [vmem:[#allocation5 + $0x390] sm:$0xf0]  ;;  %v3316_v6 = vor.u32 %v3941_v61, %v3313_v62  ;;  %v2711_v61 = vld [vmem:[#allocation5 + $0xe8] sm:$0xf] }
  0x5e   :  { %1472 = vmatpush.bf16.msra.mxu2 %v2756_v1  ;;  %v2913_v1 = vld [vmem:[#allocation5 + $0x290] sm:$0xf0]  ;;  %v3873_v2 = vld [vmem:[#allocation5 + $0x384] sm:$0xf]  ;;  %v3792_v62 = vld [vmem:[#allocation5 + $0xf4] sm:$0xf0] }
  0x5f   :  { %1460 = vmatpush.bf16.msrb.mxu3 %v2612_v7  ;;  %v3905_v4 = vld [vmem:[#allocation5 + $0x484] sm:$0xf]  ;;  %v3169_v5 = vld [vmem:[#allocation5 + $0x490] sm:$0xf0]  ;;  %v2916_v7 = vor.u32 %v3841_v63, %v2913_v1  ;;  %v3044_v8 = vor.u32 %v3873_v2, %v3041_v3  ;;  %v2967_v2 = vld [vmem:[#allocation5 + $0x2e8] sm:$0xf] }
  0x60   :  { %1422 = vmatpush.bf16.msrb.mxu0 %v3104_v20  ;;  %v3937_v10 = vld [vmem:[#allocation5 + $0x584] sm:$0xf]  ;;  %v3297_v11 = vld [vmem:[#allocation5 + $0x590] sm:$0xf0]  ;;  %v3172_v13 = vor.u32 %v3905_v4, %v3169_v5  ;;  %v3856_v3 = vld [vmem:[#allocation5 + $0x2f4] sm:$0xf0] }
  0x61   :  { %1435 = vmatpush.bf16.msrb.mxu1 %v3232_v24  ;;  %v3837_v12 = vld [vmem:[#allocation5 + $0x264] sm:$0xf]  ;;  %v2897_v14 = vld [vmem:[#allocation5 + $0x270] sm:$0xf0] }
  0x62   :  { %1473 = vmatpush.bf16.msra.mxu2 %v2740_v19  ;;  %v3869_v15 = vld [vmem:[#allocation5 + $0x364] sm:$0xf]  ;;  %v3025_v16 = vld [vmem:[#allocation5 + $0x370] sm:$0xf0]  ;;  %v3300_v19 = vor.u32 %v3937_v10, %v3297_v11  ;;  %v2900_v20 = vor.u32 %v3837_v12, %v2897_v14  ;;  %v2712_v10 = vor.u32 %v3792_v62, %v2711_v61  ;;  %v3095_v11 = vld [vmem:[#allocation5 + $0x3e8] sm:$0xf] }
  0x63   :  { %1461 = vmatpush.bf16.msrb.mxu3 %v2596_v25  ;;  %1423 = vmatmul.bf16.vlgmr.msrb.gmra.mxu0 %v4389_v34  ;;  %v3901_v17 = vld [vmem:[#allocation5 + $0x464] sm:$0xf]  ;;  %v3153_v18 = vld [vmem:[#allocation5 + $0x470] sm:$0xf0]  ;;  %v3028_v21 = vor.u32 %v3869_v15, %v3025_v16  ;;  %v3888_v12 = vld [vmem:[#allocation5 + $0x3f4] sm:$0xf0]  ;;  %v2968_v16 = vor.u32 %v3856_v3, %v2967_v2 }
  0x64   :  { %1480 = vmatpush.bf16.msra.mxu0 %v2964_v28  ;;  %1436 = vmatmul.bf16.vlgmr.msrb.gmra.mxu1 %v4391_v39  ;;  %v3933_v22 = vld [vmem:[#allocation5 + $0x564] sm:$0xf]  ;;  %v3281_v23 = vld [vmem:[#allocation5 + $0x570] sm:$0xf0]  ;;  %v3156_v25 = vor.u32 %v3901_v17, %v3153_v18  ;;  %v2839_v14 = vld [vmem:[#allocation5 + $0x1e8] sm:$0xf] }
  0x65   :  { %1493 = vmatpush.bf16.msra.mxu1 %v3092_v29  ;;  %v3833_v24 = vld [vmem:[#allocation5 + $0x244] sm:$0xf]  ;;  %v2881_v26 = vld [vmem:[#allocation5 + $0x250] sm:$0xf0]  ;;  %v3284_v31 = vor.u32 %v3933_v22, %v3281_v23  ;;  %v3824_v15 = vld [vmem:[#allocation5 + $0x1f4] sm:$0xf0] }
  0x66   :  { %1474 = vmatpush.bf16.msra.mxu2 %v2724_v38  ;;  %1462 = vmatmul.bf16.vlgmr.msrb.gmra.mxu3 %v4375_v57  ;;  %v3865_v27 = vld [vmem:[#allocation5 + $0x344] sm:$0xf]  ;;  %v3009_v28 = vld [vmem:[#allocation5 + $0x350] sm:$0xf0]  ;;  %v2695_v18 = vld [vmem:[#allocation5 + $0xc8] sm:$0xf]  ;;  %v2840_v23 = vor.u32 %v3824_v15, %v2839_v14 }
  0x67   :  { %1506 = vmatpush.bf16.msra.mxu3 %v3220_v33  ;;  %v3897_v29 = vld [vmem:[#allocation5 + $0x444] sm:$0xf]  ;;  %v3137_v30 = vld [vmem:[#allocation5 + $0x450] sm:$0xf0]  ;;  %v2884_v33 = vor.u32 %v3833_v24, %v2881_v26  ;;  %v3012_v35 = vor.u32 %v3865_v27, %v3009_v28  ;;  %v3852_v22 = vld [vmem:[#allocation5 + $0x2d4] sm:$0xf0] }
  0x68   :  { %1481 = vmatpush.bf16.msra.mxu0 %v2948_v43  ;;  %v3929_v32 = vld [vmem:[#allocation5 + $0x544] sm:$0xf]  ;;  %v3265_v36 = vld [vmem:[#allocation5 + $0x550] sm:$0xf0]  ;;  %v3140_v40 = vor.u32 %v3897_v29, %v3137_v30  ;;  %v3079_v24 = vld [vmem:[#allocation5 + $0x3c8] sm:$0xf] }
  0x69   :  { %1494 = vmatpush.bf16.msra.mxu1 %v3076_v44  ;;  %1475 = vmatmul.bf16.vlgmr.msra.gmra.mxu2 %v4381_v9  ;;  %v3829_v37 = vld [vmem:[#allocation5 + $0x224] sm:$0xf]  ;;  %v2865_v38 = vld [vmem:[#allocation5 + $0x230] sm:$0xf0]  ;;  %v3268_v46 = vor.u32 %v3929_v32, %v3265_v36  ;;  %v2823_v27 = vld [vmem:[#allocation5 + $0x1c8] sm:$0xf] }
  0x6a   :  { %1519 = vmatpush.bf16.msrb.mxu2 %v3348_v42  ;;  %v3861_v41 = vld [vmem:[#allocation5 + $0x324] sm:$0xf]  ;;  %v2993_v42 = vld [vmem:[#allocation5 + $0x330] sm:$0xf0]  ;;  %v2868_v51 = vor.u32 %v3829_v37, %v2865_v38  ;;  %v3820_v28 = vld [vmem:[#allocation5 + $0x1d4] sm:$0xf0] }
  0x6b   :  { %1507 = vmatpush.bf16.msra.mxu3 %v3204_v49  ;;  %v3893_v43 = vld [vmem:[#allocation5 + $0x424] sm:$0xf]  ;;  %v3121_v44 = vld [vmem:[#allocation5 + $0x430] sm:$0xf0]  ;;  %v2996_v52 = vor.u32 %v3861_v41, %v2993_v42  ;;  %v2679_v30 = vld [vmem:[#allocation5 + $0xa8] sm:$0xf]  ;;  %v2824_v36 = vor.u32 %v3820_v28, %v2823_v27 }
  0x6c   :  { %1482 = vmatpush.bf16.msra.mxu0 %v2932_v58  ;;  %v3925_v45 = vld [vmem:[#allocation5 + $0x524] sm:$0xf]  ;;  %v3249_v47 = vld [vmem:[#allocation5 + $0x530] sm:$0xf0]  ;;  %v3063_v37 = vld [vmem:[#allocation5 + $0x3a8] sm:$0xf] }
  0x6d   :  { %1495 = vmatpush.bf16.msra.mxu1 %v3060_v59  ;;  %v3825_v49 = vld [vmem:[#allocation5 + $0x204] sm:$0xf]  ;;  %v2849_v50 = vld [vmem:[#allocation5 + $0x210] sm:$0xf0]  ;;  %v3880_v38 = vld [vmem:[#allocation5 + $0x3b4] sm:$0xf0] }
  0x6e   :  { %1520 = vmatpush.bf16.msrb.mxu2 %v3332_v56  ;;  %v3857_v54 = vld [vmem:[#allocation5 + $0x304] sm:$0xf]  ;;  %v2977_v55 = vld [vmem:[#allocation5 + $0x310] sm:$0xf0]  ;;  %v3124_v56 = vor.u32 %v3893_v43, %v3121_v44  ;;  %v2852_v4 = vor.u32 %v3825_v49, %v2849_v50  ;;  %v2807_v41 = vld [vmem:[#allocation5 + $0x1a8] sm:$0xf] }
  0x6f   :  { %1508 = vmatpush.bf16.msra.mxu3 %v3188_v0  ;;  %v3889_v58 = vld [vmem:[#allocation5 + $0x404] sm:$0xf]  ;;  %v3105_v59 = vld [vmem:[#allocation5 + $0x410] sm:$0xf0]  ;;  %v3252_v0 = vor.u32 %v3925_v45, %v3249_v47  ;;  %v2980_v5 = vor.u32 %v3857_v54, %v2977_v55  ;;  %v3816_v42 = vld [vmem:[#allocation5 + $0x1b4] sm:$0xf0] }
  0x70   :  { %1483 = vmatpush.bf16.msra.mxu0 %v2916_v7  ;;  %v3953_v63 = vld [vmem:[#allocation5 + $0x604] sm:$0xf]  ;;  %v3361_v1 = vld [vmem:[#allocation5 + $0x610] sm:$0xf0]  ;;  %v2663_v44 = vld [vmem:[#allocation5 + $0x88] sm:$0xf]  ;;  %v2808_v50 = vor.u32 %v3816_v42, %v2807_v41 }
  0x71   :  { %1496 = vmatpush.bf16.msra.mxu1 %v3044_v8  ;;  %v3233_v7 = vld [vmem:[#allocation5 + $0x510] sm:$0xf0]  ;;  %v3108_v8 = vor.u32 %v3889_v58, %v3105_v59  ;;  %v3780_v45 = vld [vmem:[#allocation5 + $0x94] sm:$0xf0]  ;;  %v2919_v47 = vld [vmem:[#allocation5 + $0x288] sm:$0xf] }
  0x72   :  { %1521 = vmatpush.bf16.msrb.mxu2 %v3316_v6  ;;  %v3921_v6 = vld [vmem:[#allocation5 + $0x504] sm:$0xf]  ;;  %v3844_v49 = vld [vmem:[#allocation5 + $0x294] sm:$0xf0]  ;;  %v2664_v54 = vor.u32 %v3780_v45, %v2663_v44  ;;  %v2791_v55 = vld [vmem:[#allocation5 + $0x188] sm:$0xf] }
  0x73   :  { %1509 = vmatpush.bf16.msra.mxu3 %v3172_v13  ;;  %v3364_v13 = vor.u32 %v3953_v63, %v3361_v1  ;;  %v3236_v17 = vor.u32 %v3921_v6, %v3233_v7  ;;  %v2920_v58 = vor.u32 %v3844_v49, %v2919_v47  ;;  %v2647_v59 = vld [vmem:[#allocation5 + $0x68] sm:$0xf]  ;;  %v3776_v61 = vld [vmem:[#allocation5 + $0x74] sm:$0xf0] }
  0x74   :  { %1484 = vmatpush.bf16.msra.mxu0 %v2900_v20  ;;  %v3096_v20 = vor.u32 %v3888_v12, %v3095_v11  ;;  %v2903_v63 = vld [vmem:[#allocation5 + $0x268] sm:$0xf]  ;;  %v3872_v3 = vld [vmem:[#allocation5 + $0x374] sm:$0xf0] }
  0x75   :  { %1497 = vmatpush.bf16.msra.mxu1 %v3028_v21  ;;  %v2951_v21 = vld [vmem:[#allocation5 + $0x2c8] sm:$0xf]  ;;  %v3808_v6 = vld [vmem:[#allocation5 + $0x174] sm:$0xf0] }
  0x76   :  { %1522 = vmatpush.bf16.msrb.mxu2 %v3300_v19  ;;  %v3788_v19 = vld [vmem:[#allocation5 + $0xd4] sm:$0xf0]  ;;  %v2952_v29 = vor.u32 %v3852_v22, %v2951_v21  ;;  %v3031_v2 = vld [vmem:[#allocation5 + $0x368] sm:$0xf] }
  0x77   :  { %1510 = vmatpush.bf16.msra.mxu3 %v3156_v25  ;;  %v3884_v25 = vld [vmem:[#allocation5 + $0x3d4] sm:$0xf0]  ;;  %v2696_v26 = vor.u32 %v3788_v19, %v2695_v18  ;;  %v3032_v11 = vor.u32 %v3872_v3, %v3031_v2  ;;  %v2887_v12 = vld [vmem:[#allocation5 + $0x248] sm:$0xf] }
  0x78   :  { %1485 = vmatpush.bf16.msra.mxu0 %v2884_v33  ;;  %v3080_v32 = vor.u32 %v3884_v25, %v3079_v24  ;;  %v2935_v33 = vld [vmem:[#allocation5 + $0x2a8] sm:$0xf]  ;;  %v3804_v19 = vld [vmem:[#allocation5 + $0x154] sm:$0xf0] }
  0x79   :  { %1498 = vmatpush.bf16.msra.mxu1 %v3012_v35  ;;  %v3848_v35 = vld [vmem:[#allocation5 + $0x2b4] sm:$0xf0]  ;;  %v3015_v15 = vld [vmem:[#allocation5 + $0x348] sm:$0xf] }
  0x7a   :  { %1523 = vmatpush.bf16.msrb.mxu2 %v3284_v31  ;;  %v3784_v31 = vld [vmem:[#allocation5 + $0xb4] sm:$0xf0]  ;;  %v2936_v43 = vor.u32 %v3848_v35, %v2935_v33  ;;  %v2759_v18 = vld [vmem:[#allocation5 + $0x148] sm:$0xf] }
  0x7b   :  { %1511 = vmatpush.bf16.msra.mxu3 %v3140_v40  ;;  %v2680_v40 = vor.u32 %v3784_v31, %v2679_v30  ;;  %v2615_v21 = vld [vmem:[#allocation5 + $0x28] sm:$0xf]  ;;  %v3768_v22 = vld [vmem:[#allocation5 + $0x34] sm:$0xf0] }
  0x7c   :  { %1486 = vmatpush.bf16.msra.mxu0 %v2868_v51  ;;  %v3047_v51 = vld [vmem:[#allocation5 + $0x388] sm:$0xf]  ;;  %v3832_v25 = vld [vmem:[#allocation5 + $0x234] sm:$0xf0] }
  0x7d   :  { %1499 = vmatpush.bf16.msra.mxu1 %v2996_v52  ;;  %v3876_v52 = vld [vmem:[#allocation5 + $0x394] sm:$0xf0]  ;;  %v2871_v24 = vld [vmem:[#allocation5 + $0x228] sm:$0xf] }
  0x7e   :  { %1524 = vmatpush.bf16.msrb.mxu2 %v3268_v46  ;;  %v3064_v46 = vor.u32 %v3880_v38, %v3063_v37  ;;  %v3048_v62 = vor.u32 %v3876_v52, %v3047_v51  ;;  %v2999_v27 = vld [vmem:[#allocation5 + $0x328] sm:$0xf]  ;;  %v3864_v28 = vld [vmem:[#allocation5 + $0x334] sm:$0xf0]  ;;  %v2872_v33 = vor.u32 %v3832_v25, %v2871_v24  ;;  %v3790_v51 = vld [vmem:[#allocation5 + $0xec] sm:$0xf] }
  0x7f   :  { %1512 = vmatpush.bf16.msra.mxu3 %v3124_v56  ;;  %v3812_v56 = vld [vmem:[#allocation5 + $0x194] sm:$0xf0]  ;;  %v2743_v30 = vld [vmem:[#allocation5 + $0x128] sm:$0xf]  ;;  %v3000_v38 = vor.u32 %v3864_v28, %v2999_v27  ;;  %v2713_v52 = vld [vmem:[#allocation5 + $0xf8] sm:$0xf0] }
  0x80   :  { %1487 = vmatpush.bf16.msra.mxu0 %v2852_v4  ;;  %v2792_v1 = vor.u32 %v3812_v56, %v2791_v55  ;;  %v2648_v4 = vor.u32 %v3776_v61, %v2647_v59  ;;  %v3800_v31 = vld [vmem:[#allocation5 + $0x134] sm:$0xf0]  ;;  %v2855_v41 = vld [vmem:[#allocation5 + $0x208] sm:$0xf]  ;;  %v2716_v3 = vor.u32 %v3790_v51, %v2713_v52  ;;  %v2809_v27 = vld [vmem:[#allocation5 + $0x1b8] sm:$0xf0] }
  0x81   :  { %1500 = vmatpush.bf16.msra.mxu1 %v2980_v5  ;;  %v2775_v5 = vld [vmem:[#allocation5 + $0x168] sm:$0xf]  ;;  %v3764_v35 = vld [vmem:[#allocation5 + $0x14] sm:$0xf0]  ;;  %v2744_v44 = vor.u32 %v3800_v31, %v2743_v30  ;;  %v3778_v30 = vld [vmem:[#allocation5 + $0x8c] sm:$0xf] }
  0x82   :  { %1525 = vmatpush.bf16.msrb.mxu2 %v3252_v0  ;;  %v3840_v0 = vld [vmem:[#allocation5 + $0x274] sm:$0xf0]  ;;  %v2776_v14 = vor.u32 %v3808_v6, %v2775_v5  ;;  %v3351_v56 = vld [vmem:[#allocation5 + $0x5e8] sm:$0xf]  ;;  %v3786_v5 = vld [vmem:[#allocation5 + $0xcc] sm:$0xf] }
  0x83   :  { %1513 = vmatpush.bf16.msra.mxu3 %v3108_v8  ;;  %1488 = vmatmul.bf16.vlgmr.msra.gmra.mxu0 %v4373_v53  ;;  %v2904_v7 = vor.u32 %v3840_v0, %v2903_v63  ;;  %v2631_v8 = vld [vmem:[#allocation5 + $0x48] sm:$0xf]  ;;  %v3920_v37 = vld [vmem:[#allocation5 + $0x4f4] sm:$0xf0]  ;;  %v3822_v0 = vld [vmem:[#allocation5 + $0x1ec] sm:$0xf] }
  0x84   :  { %1571 = vmatpush.bf16.msrb.mxu0 %v2968_v16  ;;  %1501 = vmatmul.bf16.vlgmr.msra.gmra.mxu1 %v4377_v60  ;;  %v3868_v16 = vld [vmem:[#allocation5 + $0x354] sm:$0xf0]  ;;  %v3207_v59 = vld [vmem:[#allocation5 + $0x4c8] sm:$0xf]  ;;  %v2697_v6 = vld [vmem:[#allocation5 + $0xd8] sm:$0xf0] }
  0x85   :  { %1545 = vmatpush.bf16.msrb.mxu1 %v2712_v10  ;;  %v3772_v10 = vld [vmem:[#allocation5 + $0x54] sm:$0xf0]  ;;  %v3175_v24 = vld [vmem:[#allocation5 + $0x488] sm:$0xf]  ;;  %v2665_v31 = vld [vmem:[#allocation5 + $0x98] sm:$0xf0] }
  0x86   :  { %1526 = vmatpush.bf16.msrb.mxu2 %v3236_v17  ;;  %1514 = vmatmul.bf16.vlgmr.msra.gmra.mxu3 %v4389_v34  ;;  %v2632_v17 = vor.u32 %v3772_v10, %v2631_v8  ;;  %v3828_v42 = vld [vmem:[#allocation5 + $0x214] sm:$0xf0]  ;;  %v3335_v10 = vld [vmem:[#allocation5 + $0x5c8] sm:$0xf] }
  0x87   :  { %1539 = vmatpush.bf16.msrb.mxu3 %v3364_v13  ;;  %v3836_v13 = vld [vmem:[#allocation5 + $0x254] sm:$0xf0]  ;;  %v2856_v55 = vor.u32 %v3828_v42, %v2855_v41  ;;  %v2793_v41 = vld [vmem:[#allocation5 + $0x198] sm:$0xf0]  ;;  %v2668_v42 = vor.u32 %v3778_v30, %v2665_v31  ;;  %v3143_v51 = vld [vmem:[#allocation5 + $0x448] sm:$0xf] }
  0x88   :  { %1572 = vmatpush.bf16.msrb.mxu0 %v2952_v29  ;;  %v2616_v29 = vor.u32 %v3768_v22, %v2615_v21  ;;  %v3860_v45 = vld [vmem:[#allocation5 + $0x314] sm:$0xf0]  ;;  %v3319_v22 = vld [vmem:[#allocation5 + $0x5a8] sm:$0xf]  ;;  %v3097_v30 = vld [vmem:[#allocation5 + $0x3f8] sm:$0xf0] }
  0x89   :  { %1546 = vmatpush.bf16.msrb.mxu1 %v2696_v26  ;;  %1527 = vmatmul.bf16.vlgmr.msrb.gmra.mxu2 %v4391_v39  ;;  %v2760_v26 = vor.u32 %v3804_v19, %v2759_v18  ;;  %v3956_v47 = vld [vmem:[#allocation5 + $0x614] sm:$0xf0]  ;;  %v3782_v18 = vld [vmem:[#allocation5 + $0xac] sm:$0xf]  ;;  %v2681_v19 = vld [vmem:[#allocation5 + $0xb8] sm:$0xf0] }
  0x8a   :  { %1584 = vmatpush.bf16.msra.mxu2 %v3096_v20  ;;  %v2888_v20 = vor.u32 %v3836_v13, %v2887_v12  ;;  %v3191_v12 = vld [vmem:[#allocation5 + $0x4a8] sm:$0xf]  ;;  %v3912_v13 = vld [vmem:[#allocation5 + $0x4b4] sm:$0xf0]  ;;  %v2684_v28 = vor.u32 %v3782_v18, %v2681_v19  ;;  %v2745_v18 = vld [vmem:[#allocation5 + $0x138] sm:$0xf0] }
  0x8b   :  { %1558 = vmatpush.bf16.msra.mxu3 %v2840_v23  ;;  %v3016_v23 = vor.u32 %v3868_v16, %v3015_v15  ;;  %v2825_v15 = vld [vmem:[#allocation5 + $0x1d8] sm:$0xf0]  ;;  %v2700_v16 = vor.u32 %v3786_v5, %v2697_v6  ;;  %v3908_v25 = vld [vmem:[#allocation5 + $0x494] sm:$0xf0] }
  0x8c   :  { %1573 = vmatpush.bf16.msrb.mxu0 %v2936_v43  ;;  %v2983_v43 = vld [vmem:[#allocation5 + $0x308] sm:$0xf]  ;;  %v3900_v52 = vld [vmem:[#allocation5 + $0x454] sm:$0xf0]  ;;  %v2761_v5 = vld [vmem:[#allocation5 + $0x158] sm:$0xf0] }
  0x8d   :  { %1547 = vmatpush.bf16.msrb.mxu1 %v2680_v40  ;;  %v2727_v40 = vld [vmem:[#allocation5 + $0x108] sm:$0xf]  ;;  %v2984_v61 = vor.u32 %v3860_v45, %v2983_v43  ;;  %v2649_v45 = vld [vmem:[#allocation5 + $0x78] sm:$0xf0] }
  0x8e   :  { %1585 = vmatpush.bf16.msra.mxu2 %v3080_v32  ;;  %v2599_v32 = vld [vmem:[#allocation5 + $0x8] sm:$0xf] }
  0x8f   :  { %1559 = vmatpush.bf16.msra.mxu3 %v2824_v36  ;;  %v3223_v36 = vld [vmem:[#allocation5 + $0x4e8] sm:$0xf]  ;;  %v2600_v49 = vor.u32 %v3764_v35, %v2599_v32  ;;  %v3176_v32 = vor.u32 %v3908_v25, %v3175_v24  ;;  %v3762_v24 = vld [vmem:[#allocation5 + $0xc] sm:$0xf]  ;;  %v2601_v25 = vld [vmem:[#allocation5 + $0x18] sm:$0xf0] }
  0x90   :  { %1574 = vmatpush.bf16.msrb.mxu0 %v2920_v58  ;;  %v3952_v58 = vld [vmem:[#allocation5 + $0x5f4] sm:$0xf0]  ;;  %v3303_v35 = vld [vmem:[#allocation5 + $0x588] sm:$0xf] }
  0x91   :  { %1548 = vmatpush.bf16.msrb.mxu1 %v2664_v54  ;;  %v3224_v54 = vor.u32 %v3920_v37, %v3223_v36  ;;  %v3940_v36 = vld [vmem:[#allocation5 + $0x594] sm:$0xf0]  ;;  %v3159_v37 = vld [vmem:[#allocation5 + $0x468] sm:$0xf] }
  0x92   :  { %1586 = vmatpush.bf16.msra.mxu2 %v3064_v46  ;;  %v3367_v46 = vld [vmem:[#allocation5 + $0x608] sm:$0xf]  ;;  %v3304_v43 = vor.u32 %v3940_v36, %v3303_v35  ;;  %v3850_v35 = vld [vmem:[#allocation5 + $0x2cc] sm:$0xf]  ;;  %v2604_v36 = vor.u32 %v3762_v24, %v2601_v25 }
  0x93   :  { %1560 = vmatpush.bf16.msra.mxu3 %v2808_v50  ;;  %v3796_v50 = vld [vmem:[#allocation5 + $0x114] sm:$0xf0]  ;;  %v3368_v63 = vor.u32 %v3956_v47, %v3367_v46  ;;  %v3870_v24 = vld [vmem:[#allocation5 + $0x36c] sm:$0xf] }
  0x94   :  { %1575 = vmatpush.bf16.msrb.mxu0 %v2904_v7  ;;  %v2728_v2 = vor.u32 %v3796_v50, %v2727_v40  ;;  %v3810_v40 = vld [vmem:[#allocation5 + $0x18c] sm:$0xf]  ;;  %v3936_v50 = vld [vmem:[#allocation5 + $0x574] sm:$0xf0] }
  0x95   :  { %1549 = vmatpush.bf16.msrb.mxu1 %v2648_v4  ;;  %v3352_v4 = vor.u32 %v3952_v58, %v3351_v56  ;;  %v2796_v47 = vor.u32 %v3810_v40, %v2793_v41  ;;  %v2729_v40 = vld [vmem:[#allocation5 + $0x118] sm:$0xf0] }
  0x96   :  { %1587 = vmatpush.bf16.msra.mxu2 %v3048_v62  ;;  %3374 = vmatmul.msk.bf16.vlgmr.msrb.gmra.mxu3 %vm1359_vm0, %v4385_v48  ;;  %v3916_v62 = vld [vmem:[#allocation5 + $0x4d4] sm:$0xf0] }
  0x97   :  { %1561 = vmatpush.bf16.msra.mxu3 %v2792_v1  ;;  %v2841_v1 = vld [vmem:[#allocation5 + $0x1f8] sm:$0xf0]  ;;  %v3208_v7 = vor.u32 %v3916_v62, %v3207_v59  ;;  %v3770_v59 = vld [vmem:[#allocation5 + $0x4c] sm:$0xf]  ;;  %v3144_v62 = vor.u32 %v3900_v52, %v3143_v51 }
  0x98   :  { %1576 = vmatpush.bf16.msrb.mxu0 %v2888_v20  ;;  %v2844_v8 = vor.u32 %v3822_v0, %v2841_v1  ;;  %v3192_v20 = vor.u32 %v3912_v13, %v3191_v12  ;;  %v3271_v0 = vld [vmem:[#allocation5 + $0x548] sm:$0xf]  ;;  %v3932_v1 = vld [vmem:[#allocation5 + $0x554] sm:$0xf0]  ;;  %v3914_v51 = vld [vmem:[#allocation5 + $0x4cc] sm:$0xf] }
  0x99   :  { %1550 = vmatpush.bf16.msrb.mxu1 %v2632_v17  ;;  %v3255_v13 = vld [vmem:[#allocation5 + $0x528] sm:$0xf]  ;;  %v3209_v52 = vld [vmem:[#allocation5 + $0x4d8] sm:$0xf0] }
  0x9a   :  { %1588 = vmatpush.bf16.msra.mxu2 %v3032_v11  ;;  %v3948_v11 = vld [vmem:[#allocation5 + $0x5d4] sm:$0xf0] }
  0x9b   :  { %1562 = vmatpush.bf16.msra.mxu3 %v2776_v14  ;;  %v3818_v14 = vld [vmem:[#allocation5 + $0x1cc] sm:$0xf]  ;;  %v3336_v17 = vor.u32 %v3948_v11, %v3335_v10  ;;  %v2617_v10 = vld [vmem:[#allocation5 + $0x38] sm:$0xf0] }
  0x9c   :  { %1577 = vmatpush.bf16.msrb.mxu0 %v2872_v33  ;;  %v2828_v21 = vor.u32 %v3818_v14, %v2825_v15  ;;  %v3928_v14 = vld [vmem:[#allocation5 + $0x534] sm:$0xf0]  ;;  %v3111_v15 = vld [vmem:[#allocation5 + $0x408] sm:$0xf] }
  0x9d   :  { %1551 = vmatpush.bf16.msrb.mxu1 %v2616_v29 }
  0x9e   :  { %1589 = vmatpush.bf16.msra.mxu2 %v3016_v23  ;;  %v3944_v23 = vld [vmem:[#allocation5 + $0x5b4] sm:$0xf0] }
  0x9f   :  { %1563 = vmatpush.bf16.msra.mxu3 %v2760_v26  ;;  %v3814_v26 = vld [vmem:[#allocation5 + $0x1ac] sm:$0xf]  ;;  %v3320_v29 = vor.u32 %v3944_v23, %v3319_v22  ;;  %v3256_v22 = vor.u32 %v3928_v14, %v3255_v13  ;;  %v3239_v23 = vld [vmem:[#allocation5 + $0x508] sm:$0xf]  ;;  %v3049_v14 = vld [vmem:[#allocation5 + $0x398] sm:$0xf0] }
  0xa0   :  { %1578 = vmatpush.bf16.msrb.mxu0 %v2856_v55  ;;  %v2812_v33 = vor.u32 %v3814_v26, %v2809_v27  ;;  %v2777_v55 = vld [vmem:[#allocation5 + $0x178] sm:$0xf0] }
  0xa1   :  { %1552 = vmatpush.bf16.msrb.mxu1 %v2600_v49  ;;  %v3287_v49 = vld [vmem:[#allocation5 + $0x568] sm:$0xf] }
  0xa2   :  { %1590 = vmatpush.bf16.msra.mxu2 %v3000_v38  ;;  %v3904_v38 = vld [vmem:[#allocation5 + $0x474] sm:$0xf0]  ;;  %v3288_v58 = vor.u32 %v3936_v50, %v3287_v49  ;;  %v3081_v50 = vld [vmem:[#allocation5 + $0x3d8] sm:$0xf0] }
  0xa3   :  { %1564 = vmatpush.bf16.msra.mxu3 %v2744_v44  ;;  %1579 = vmatmul.bf16.vlgmr.msrb.gmra.mxu0 %v4373_v53  ;;  %v3774_v44 = vld [vmem:[#allocation5 + $0x6c] sm:$0xf]  ;;  %v3160_v46 = vor.u32 %v3904_v38, %v3159_v37  ;;  %v2953_v37 = vld [vmem:[#allocation5 + $0x2d8] sm:$0xf0] }
  0xa4   :  { %1630 = vmatpush.bf16.msra.mxu0 %v3368_v63  ;;  %1553 = vmatmul.bf16.vlgmr.msrb.gmra.mxu1 %v4375_v57  ;;  %v2652_v56 = vor.u32 %v3774_v44, %v2649_v45  ;;  %v3794_v38 = vld [vmem:[#allocation5 + $0x10c] sm:$0xf] }
  0xa5   :  { %1597 = vmatpush.bf16.msra.mxu1 %v3224_v54  ;;  %v3806_v54 = vld [vmem:[#allocation5 + $0x16c] sm:$0xf]  ;;  %v2732_v49 = vor.u32 %v3794_v38, %v2729_v40 }
  0xa6   :  { %1591 = vmatpush.bf16.msra.mxu2 %v2984_v61  ;;  %v2633_v61 = vld [vmem:[#allocation5 + $0x58] sm:$0xf0]  ;;  %v2780_v63 = vor.u32 %v3806_v54, %v2777_v55  ;;  %v3846_v55 = vld [vmem:[#allocation5 + $0x2ac] sm:$0xf] }
  0xa7   :  { %1565 = vmatpush.bf16.msra.mxu3 %v2728_v2  ;;  %v3127_v2 = vld [vmem:[#allocation5 + $0x428] sm:$0xf]  ;;  %v2636_v6 = vor.u32 %v3770_v59, %v2633_v61  ;;  %v3337_v59 = vld [vmem:[#allocation5 + $0x5d8] sm:$0xf0]  ;;  %v3866_v38 = vld [vmem:[#allocation5 + $0x34c] sm:$0xf] }
  0xa8   :  { %1649 = vmatpush.bf16.msrb.mxu0 %v2844_v8  ;;  %v3766_v8 = vld [vmem:[#allocation5 + $0x2c] sm:$0xf] }
  0xa9   :  { %1598 = vmatpush.bf16.msra.mxu1 %v3208_v7  ;;  %1592 = vmatmul.bf16.vlgmr.msra.gmra.mxu2 %v4377_v60  ;;  %v3272_v7 = vor.u32 %v3932_v1, %v3271_v0  ;;  %v2620_v19 = vor.u32 %v3766_v8, %v2617_v10  ;;  %v3065_v1 = vld [vmem:[#allocation5 + $0x3b8] sm:$0xf0] }
  0xaa   :  { %1636 = vmatpush.bf16.msrb.mxu2 %v2716_v3  ;;  %1566 = vmatmul.bf16.vlgmr.msra.gmra.mxu3 %v4381_v9  ;;  %v3896_v3 = vld [vmem:[#allocation5 + $0x434] sm:$0xf0]  ;;  %v3321_v8 = vld [vmem:[#allocation5 + $0x5b8] sm:$0xf0] }
  0xab   :  { %1610 = vmatpush.bf16.msrb.mxu3 %v3352_v4  ;;  %v3802_v4 = vld [vmem:[#allocation5 + $0x14c] sm:$0xf]  ;;  %v3128_v11 = vor.u32 %v3896_v3, %v3127_v2  ;;  %v3193_v3 = vld [vmem:[#allocation5 + $0x4b8] sm:$0xf0] }
  0xac   :  { %1650 = vmatpush.bf16.msrb.mxu0 %v2828_v21  ;;  %v2764_v12 = vor.u32 %v3802_v4, %v2761_v5  ;;  %v2969_v21 = vld [vmem:[#allocation5 + $0x2f8] sm:$0xf0]  ;;  %v3910_v2 = vld [vmem:[#allocation5 + $0x4ac] sm:$0xf] }
  0xad   :  { %1599 = vmatpush.bf16.msra.mxu1 %v3192_v20  ;;  %v3854_v20 = vld [vmem:[#allocation5 + $0x2ec] sm:$0xf] }
  0xae   :  { %1637 = vmatpush.bf16.msrb.mxu2 %v2700_v16  ;;  %v3892_v16 = vld [vmem:[#allocation5 + $0x414] sm:$0xf0]  ;;  %v2972_v31 = vor.u32 %v3854_v20, %v2969_v21  ;;  %v3842_v5 = vld [vmem:[#allocation5 + $0x28c] sm:$0xf]  ;;  %v3305_v21 = vld [vmem:[#allocation5 + $0x598] sm:$0xf0] }
  0xaf   :  { %1611 = vmatpush.bf16.msrb.mxu3 %v3336_v17  ;;  %v3798_v17 = vld [vmem:[#allocation5 + $0x12c] sm:$0xf]  ;;  %v3112_v26 = vor.u32 %v3892_v16, %v3111_v15  ;;  %v3177_v16 = vld [vmem:[#allocation5 + $0x498] sm:$0xf0] }
  0xb0   :  { %1651 = vmatpush.bf16.msrb.mxu0 %v2812_v33  ;;  %v2748_v27 = vor.u32 %v3798_v17, %v2745_v18  ;;  %v3225_v33 = vld [vmem:[#allocation5 + $0x4f8] sm:$0xf0]  ;;  %v3906_v15 = vld [vmem:[#allocation5 + $0x48c] sm:$0xf] }
  0xb1   :  { %1600 = vmatpush.bf16.msra.mxu1 %v3176_v32  ;;  %v3918_v32 = vld [vmem:[#allocation5 + $0x4ec] sm:$0xf] }
  0xb2   :  { %1638 = vmatpush.bf16.msrb.mxu2 %v2684_v28  ;;  %v3924_v28 = vld [vmem:[#allocation5 + $0x514] sm:$0xf0]  ;;  %v3228_v45 = vor.u32 %v3918_v32, %v3225_v33  ;;  %v3838_v18 = vld [vmem:[#allocation5 + $0x26c] sm:$0xf]  ;;  %v3289_v33 = vld [vmem:[#allocation5 + $0x578] sm:$0xf0] }
  0xb3   :  { %1612 = vmatpush.bf16.msrb.mxu3 %v3320_v29  ;;  %3375 = vmatmul.msk.bf16.vlgmr.msra.gmra.mxu0 %vm1359_vm0, %v4385_v48  ;;  %v3886_v29 = vld [vmem:[#allocation5 + $0x3ec] sm:$0xf]  ;;  %v3240_v41 = vor.u32 %v3924_v28, %v3239_v23  ;;  %v3180_v23 = vor.u32 %v3906_v15, %v3177_v16  ;;  %v3161_v28 = vld [vmem:[#allocation5 + $0x478] sm:$0xf0] }
  0xb4   :  { %1652 = vmatpush.bf16.msrb.mxu0 %v2796_v47  ;;  %v3100_v44 = vor.u32 %v3886_v29, %v3097_v30  ;;  %v2956_v47 = vor.u32 %v3850_v35, %v2953_v37  ;;  %v3834_v30 = vld [vmem:[#allocation5 + $0x24c] sm:$0xf]  ;;  %v3113_v15 = vld [vmem:[#allocation5 + $0x418] sm:$0xf0] }
  0xb5   :  { %1601 = vmatpush.bf16.msra.mxu1 %v3160_v46  ;;  %v3882_v46 = vld [vmem:[#allocation5 + $0x3cc] sm:$0xf] }
  0xb6   :  { %1639 = vmatpush.bf16.msrb.mxu2 %v2668_v42  ;;  %v3950_v42 = vld [vmem:[#allocation5 + $0x5ec] sm:$0xf]  ;;  %v3084_v61 = vor.u32 %v3882_v46, %v3081_v50 }
  0xb7   :  { %1613 = vmatpush.bf16.msrb.mxu3 %v3304_v43  ;;  %v3353_v43 = vld [vmem:[#allocation5 + $0x5f8] sm:$0xf0]  ;;  %v3934_v32 = vld [vmem:[#allocation5 + $0x56c] sm:$0xf] }
  0xb8   :  { %1653 = vmatpush.bf16.msrb.mxu0 %v2780_v63  ;;  %v3356_v54 = vor.u32 %v3950_v42, %v3353_v43  ;;  %v3878_v63 = vld [vmem:[#allocation5 + $0x3ac] sm:$0xf]  ;;  %v3017_v42 = vld [vmem:[#allocation5 + $0x358] sm:$0xf0] }
  0xb9   :  { %1602 = vmatpush.bf16.msra.mxu1 %v3144_v62  ;;  %v3212_v62 = vor.u32 %v3914_v51, %v3209_v52  ;;  %v3068_v10 = vor.u32 %v3878_v63, %v3065_v1  ;;  %v3898_v43 = vld [vmem:[#allocation5 + $0x44c] sm:$0xf]  ;;  %v3273_v51 = vld [vmem:[#allocation5 + $0x558] sm:$0xf0]  ;;  %v3020_v52 = vor.u32 %v3866_v38, %v3017_v42  ;;  %v3419_v42 = vld [vmem:[#allocation8 + $0x50] sm:$0xf] }
  0xba   :  { %1640 = vmatpush.bf16.msrb.mxu2 %v2652_v56  ;;  %v2937_v56 = vld [vmem:[#allocation5 + $0x2b8] sm:$0xf0]  ;;  %v3830_v46 = vld [vmem:[#allocation5 + $0x22c] sm:$0xf] }
  0xbb   :  { %1614 = vmatpush.bf16.msrb.mxu3 %v3288_v58  ;;  %v3946_v58 = vld [vmem:[#allocation5 + $0x5cc] sm:$0xf]  ;;  %v2940_v0 = vor.u32 %v3846_v55, %v2937_v56 }
  0xbc   :  { %1654 = vmatpush.bf16.msrb.mxu0 %v2764_v12  ;;  %v3340_v4 = vor.u32 %v3946_v58, %v3337_v59  ;;  %v3874_v12 = vld [vmem:[#allocation5 + $0x38c] sm:$0xf]  ;;  %v3001_v58 = vld [vmem:[#allocation5 + $0x338] sm:$0xf0] }
  0xbd   :  { %1603 = vmatpush.bf16.msra.mxu1 %v3128_v11  ;;  %v3196_v11 = vor.u32 %v3910_v2, %v3193_v3  ;;  %v3930_v50 = vld [vmem:[#allocation5 + $0x54c] sm:$0xf]  ;;  %v3257_v3 = vld [vmem:[#allocation5 + $0x538] sm:$0xf0] }
  0xbe   :  { %1641 = vmatpush.bf16.msrb.mxu2 %v2636_v6  ;;  %v2921_v6 = vld [vmem:[#allocation5 + $0x298] sm:$0xf0]  ;;  %v3862_v55 = vld [vmem:[#allocation5 + $0x32c] sm:$0xf] }
  0xbf   :  { %1615 = vmatpush.bf16.msrb.mxu3 %v3272_v7  ;;  %v3942_v7 = vld [vmem:[#allocation5 + $0x5ac] sm:$0xf]  ;;  %v2924_v13 = vor.u32 %v3842_v5, %v2921_v6  ;;  %v4413_v20 = vpop.f32.mrf.mxu0  ;;  %v3369_v5 = vld [vmem:[#allocation5 + $0x618] sm:$0xf0]  ;;  %v4421_v6 = vld [vmem:[#allocation7] sm:$0xf] }
  0xc0   :  { %1655 = vmatpush.bf16.msrb.mxu0 %v2748_v27  ;;  %v3324_v17 = vor.u32 %v3942_v7, %v3321_v8  ;;  %v3902_v27 = vld [vmem:[#allocation5 + $0x46c] sm:$0xf]  ;;  %v4415_v29 = vpop.f32.mrf.mxu1  ;;  %v3004_v8 = vor.u32 %v3862_v55, %v3001_v58 }
  0xc1   :  { %1604 = vmatpush.bf16.msra.mxu1 %v3112_v26  ;;  %v3033_v26 = vld [vmem:[#allocation5 + $0x378] sm:$0xf0]  ;;  %v3164_v37 = vor.u32 %v3902_v27, %v3161_v28  ;;  %v3894_v59 = vld [vmem:[#allocation5 + $0x42c] sm:$0xf] }
  0xc2   :  { %1642 = vmatpush.bf16.msrb.mxu2 %v2620_v19  ;;  %v2905_v19 = vld [vmem:[#allocation5 + $0x278] sm:$0xf0]  ;;  %v3826_v63 = vld [vmem:[#allocation5 + $0x20c] sm:$0xf] }
  0xc3   :  { %1616 = vmatpush.bf16.msrb.mxu3 %v3256_v22  ;;  %v3052_v22 = vor.u32 %v3874_v12, %v3049_v14  ;;  %v2908_v25 = vor.u32 %v3838_v18, %v2905_v19  ;;  %v3926_v1 = vld [vmem:[#allocation5 + $0x52c] sm:$0xf]  ;;  %v3435_v19 = vld [vmem:[#allocation8 + $0x70] sm:$0xf] }
  0xc4   :  { %1605 = vmatmul.bf16.vlgmr.msra.gmra.mxu1 %v4389_v34  ;;  %1656 = vmatpush.bf16.msrb.mxu0 %v2732_v49  ;;  %v3890_v14 = vld [vmem:[#allocation5 + $0x40c] sm:$0xf] }
  0xc5   :  { %1662 = vmatpush.bf16.msrb.mxu1 %v2972_v31  ;;  %v2889_v31 = vld [vmem:[#allocation5 + $0x258] sm:$0xf0]  ;;  %v3116_v27 = vor.u32 %v3890_v14, %v3113_v15  ;;  %v3451_v15 = vld [vmem:[#allocation8 + $0x90] sm:$0xf] }
  0xc6   :  { %1643 = vmatpush.bf16.msrb.mxu2 %v2604_v36  ;;  %v3036_v36 = vor.u32 %v3870_v24, %v3033_v26  ;;  %v2892_v40 = vor.u32 %v3834_v30, %v2889_v31  ;;  %v3988_v24 = vld [vmem:[#allocation8 + $0xf4] sm:$0xf0]  ;;  %v3427_v30 = vld [vmem:[#allocation8 + $0x60] sm:$0xf]  ;;  %v3970_v31 = vld [vmem:[#allocation8 + $0x64] sm:$0xf0] }
  0xc7   :  { %1617 = vmatpush.bf16.msrb.mxu3 %v3240_v41  ;;  %1657 = vmatmul.bf16.vlgmr.msrb.gmra.mxu0 %v4381_v9  ;;  %v4417_v35 = vpop.f32.mrf.mxu2  ;;  %v1374_v49 = vpop.f32.mrf.mxu0 }
  0xc8   :  { %1701 = vmatpush.bf16.msra.mxu0 %v3356_v54  ;;  %v1387_v2 = vpop.f32.mrf.mxu1  ;;  %v3966_v49 = vld [vmem:[#allocation8 + $0x44] sm:$0xf0] }
  0xc9   :  { %1663 = vmatpush.bf16.msrb.mxu1 %v2956_v47  ;;  %1644 = vmatmul.bf16.vlgmr.msrb.gmra.mxu2 %v4375_v57  ;;  %v3938_v57 = vld [vmem:[#allocation5 + $0x58c] sm:$0xf]  ;;  %v4419_v41 = vpop.f32.mrf.mxu3  ;;  %v2873_v47 = vld [vmem:[#allocation5 + $0x238] sm:$0xf0] }
  0xca   :  { %1688 = vmatpush.bf16.msra.mxu2 %v3228_v45  ;;  %1618 = vmatmul.bf16.vlgmr.msrb.gmra.mxu3 %v4391_v39  ;;  %v3308_v9 = vor.u32 %v3938_v57, %v3305_v21  ;;  %v3292_v45 = vor.u32 %v3934_v32, %v3289_v33  ;;  %v2876_v56 = vor.u32 %v3830_v46, %v2873_v47  ;;  %v3972_v57 = vld [vmem:[#allocation8 + $0x74] sm:$0xf0]  ;;  %v3922_v21 = vld [vmem:[#allocation5 + $0x50c] sm:$0xf]  ;;  %v3491_v33 = vld [vmem:[#allocation8 + $0xe0] sm:$0xf] }
  0xcb   :  { %1675 = vmatpush.bf16.msra.mxu3 %v3100_v44  ;;  %v3145_v44 = vld [vmem:[#allocation5 + $0x458] sm:$0xf0]  ;;  %v3436_v28 = vor.u32 %v3972_v57, %v3435_v19  ;;  %v3962_v2 = vld [vmem:[#allocation8 + $0x24] sm:$0xf0]  ;;  %v3379_v19 = vld [vmem:[#allocation8] sm:$0xf] }
  0xcc   :  { %1702 = vmatpush.bf16.msra.mxu0 %v3340_v4  ;;  %v3148_v54 = vor.u32 %v3898_v43, %v3145_v44  ;;  %v3954_v4 = vld [vmem:[#allocation5 + $0x60c] sm:$0xf]  ;;  %v3968_v43 = vld [vmem:[#allocation8 + $0x54] sm:$0xf0] }
  0xcd   :  { %1664 = vmatpush.bf16.msrb.mxu1 %v2940_v0  ;;  %v2857_v0 = vld [vmem:[#allocation5 + $0x218] sm:$0xf0]  ;;  %v3372_v18 = vor.u32 %v3954_v4, %v3369_v5  ;;  %v3459_v5 = vld [vmem:[#allocation8 + $0xa0] sm:$0xf]  ;;  %v3958_v57 = vld [vmem:[#allocation8 + $0x4] sm:$0xf0] }
  0xce   :  { %1689 = vmatpush.bf16.msra.mxu2 %v3212_v62  ;;  %v3276_v62 = vor.u32 %v3930_v50, %v3273_v51  ;;  %v2860_v12 = vor.u32 %v3826_v63, %v2857_v0  ;;  %v3984_v46 = vld [vmem:[#allocation8 + $0xd4] sm:$0xf0] }
  0xcf   :  { %1676 = vmatpush.bf16.msra.mxu3 %v3084_v61  ;;  %v3129_v61 = vld [vmem:[#allocation5 + $0x438] sm:$0xf0]  ;;  %v1400_v7 = vpop.f32.mrf.mxu2 }
  0xd0   :  { %1703 = vmatpush.bf16.msra.mxu0 %v3324_v17  ;;  %v3260_v17 = vor.u32 %v3926_v1, %v3257_v3  ;;  %v3395_v1 = vld [vmem:[#allocation8 + $0x20] sm:$0xf]  ;;  %v3978_v7 = vld [vmem:[#allocation8 + $0xa4] sm:$0xf0] }
  0xd1   :  { %1665 = vmatpush.bf16.msrb.mxu1 %v2924_v13  ;;  %v2985_v13 = vld [vmem:[#allocation5 + $0x318] sm:$0xf0]  ;;  %v1413_v16 = vpop.f32.mrf.mxu3  ;;  %v3460_v14 = vor.u32 %v3978_v7, %v3459_v5  ;;  %v3961_v7 = vld [vmem:[#allocation8 + $0x24] sm:$0xf] }
  0xd2   :  { %1690 = vmatpush.bf16.msra.mxu2 %v3196_v11  ;;  %v3858_v11 = vld [vmem:[#allocation5 + $0x30c] sm:$0xf]  ;;  %v3976_v16 = vld [vmem:[#allocation8 + $0x94] sm:$0xf0] }
  0xd3   :  { %1677 = vmatpush.bf16.msra.mxu3 %v3068_v10  ;;  %v3132_v10 = vor.u32 %v3894_v59, %v3129_v61  ;;  %v2988_v26 = vor.u32 %v3858_v11, %v2985_v13  ;;  %v3964_v59 = vld [vmem:[#allocation8 + $0x34] sm:$0xf0]  ;;  %v3467_v61 = vld [vmem:[#allocation8 + $0xb0] sm:$0xf] }
  0xd4   :  { %1704 = vmatpush.bf16.msra.mxu0 %v3308_v9  ;;  %v3960_v13 = vld [vmem:[#allocation8 + $0x14] sm:$0xf0] }
  0xd5   :  { %1666 = vmatpush.bf16.msrb.mxu1 %v2908_v25  ;;  %v347_v25 = vperm.slane %v4421_v6, 0 }
  0xd6   :  { %1691 = vmatpush.bf16.msra.mxu2 %v3180_v23  ;;  %v3499_v23 = vld [vmem:[#allocation8 + $0xf0] sm:$0xf] }
  0xd7   :  { %1678 = vmatpush.bf16.msra.mxu3 %v3052_v22  ;;  %v3241_v22 = vld [vmem:[#allocation5 + $0x518] sm:$0xf0]  ;;  %v3500_v32 = vor.u32 %v3988_v24, %v3499_v23  ;;  %v1450_v38 = vpop.f32.mrf.mxu2  ;;  %v3437_v23 = vld [vmem:[#allocation8 + $0x78] sm:$0xf0]  ;;  %v3443_v24 = vld [vmem:[#allocation8 + $0x80] sm:$0xf] }
  0xd8   :  { %1705 = vmatpush.bf16.msra.mxu0 %v3292_v45  ;;  %v3244_v9 = vor.u32 %v3922_v21, %v3241_v22  ;;  %v3483_v45 = vld [vmem:[#allocation8 + $0xd0] sm:$0xf]  ;;  %v3971_v21 = vld [vmem:[#allocation8 + $0x74] sm:$0xf] }
  0xd9   :  { %1667 = vmatpush.bf16.msrb.mxu1 %v2892_v40  ;;  %v3428_v40 = vor.u32 %v3970_v31, %v3427_v30  ;;  %v3484_v50 = vor.u32 %v3984_v46, %v3483_v45  ;;  %v3440_v31 = vor.u32 %v3971_v21, %v3437_v23  ;;  %v3421_v45 = vld [vmem:[#allocation8 + $0x58] sm:$0xf0]  ;;  %v3959_v21 = vld [vmem:[#allocation8 + $0x14] sm:$0xf] }
  0xda   :  { %1692 = vmatpush.bf16.msra.mxu2 %v3164_v37  ;;  %v1373_v37 = vadd.f32 %v4413_v20, %v347_v25  ;;  %v3411_v20 = vld [vmem:[#allocation8 + $0x40] sm:$0xf]  ;;  %v3974_v25 = vld [vmem:[#allocation8 + $0x84] sm:$0xf0]  ;;  %v3975_v23 = vld [vmem:[#allocation8 + $0x94] sm:$0xf] }
  0xdb   :  { %1679 = vmatpush.bf16.msra.mxu3 %v3036_v36  ;;  %v3986_v36 = vld [vmem:[#allocation8 + $0xe4] sm:$0xf0]  ;;  %v3412_v58 = vor.u32 %v3966_v49, %v3411_v20  ;;  %v3965_v49 = vld [vmem:[#allocation8 + $0x44] sm:$0xf] }
  0xdc   :  { %1706 = vmatpush.bf16.msra.mxu0 %v3276_v62  ;;  %v3492_v44 = vor.u32 %v3986_v36, %v3491_v33  ;;  %v1386_v47 = vadd.f32 %v4415_v29, %v1373_v37  ;;  %v3403_v29 = vld [vmem:[#allocation8 + $0x30] sm:$0xf]  ;;  %v3969_v33 = vld [vmem:[#allocation8 + $0x64] sm:$0xf]  ;;  %v3429_v36 = vld [vmem:[#allocation8 + $0x68] sm:$0xf0] }
  0xdd   :  { %1668 = vmatpush.bf16.msrb.mxu1 %v2876_v56  ;;  %v3404_v63 = vor.u32 %v3964_v59, %v3403_v29  ;;  %v3555_v29 = vld [vmem:[#allocation8 + $0x160] sm:$0xf]  ;;  %v4002_v59 = vld [vmem:[#allocation8 + $0x164] sm:$0xf0] }
  0xde   :  { %1693 = vmatpush.bf16.msra.mxu2 %v3148_v54  ;;  %v3982_v54 = vld [vmem:[#allocation8 + $0xc4] sm:$0xf0]  ;;  %v1399_v55 = vadd.f32 %v4417_v35, %v1386_v47  ;;  %v3983_v47 = vld [vmem:[#allocation8 + $0xd4] sm:$0xf] }
  0xdf   :  { %1680 = vmatpush.bf16.msra.mxu3 %v3020_v52  ;;  %v3475_v52 = vld [vmem:[#allocation8 + $0xc0] sm:$0xf]  ;;  %v1452_v56 = vpop.f32.mrf.mxu2 }
  0xe0   :  { %1707 = vmatpush.bf16.msra.mxu0 %v3260_v17  ;;  %v1424_v51 = vpop.f32.mrf.mxu0  ;;  %v1412_v62 = vadd.f32 %v4419_v41, %v1399_v55  ;;  %v3563_v55 = vld [vmem:[#allocation8 + $0x170] sm:$0xf] }
  0xe1   :  { %1669 = vmatpush.bf16.msrb.mxu1 %v2860_v12  ;;  %v3387_v12 = vld [vmem:[#allocation8 + $0x10] sm:$0xf] }
  0xe2   :  { %1694 = vmatpush.bf16.msra.mxu2 %v3132_v10  ;;  %v1425_v0 = vadd.f32 %v1424_v51, %v1412_v62  ;;  %v3396_v10 = vor.u32 %v3962_v2, %v3395_v1  ;;  %v3388_v17 = vor.u32 %v3960_v13, %v3387_v12  ;;  %v3963_v62 = vld [vmem:[#allocation8 + $0x34] sm:$0xf]  ;;  %v3556_v1 = vor.u32 %v4002_v59, %v3555_v29  ;;  %v3461_v13 = vld [vmem:[#allocation8 + $0xa8] sm:$0xf0]  ;;  %v3990_v29 = vld [vmem:[#allocation8 + $0x104] sm:$0xf0] }
  0xe3   :  { %1681 = vmatpush.bf16.msra.mxu3 %v3004_v8  ;;  %v3979_v2 = vld [vmem:[#allocation8 + $0xb4] sm:$0xf] }
  0xe4   :  { %1670 = vmatmul.bf16.vlgmr.msrb.gmra.mxu1 %v4373_v53  ;;  %1708 = vmatpush.bf16.msra.mxu0 %v3244_v9  ;;  %v3420_v53 = vor.u32 %v3968_v43, %v3419_v42  ;;  %v3432_v43 = vor.u32 %v3969_v33, %v3429_v36  ;;  %v3973_v33 = vld [vmem:[#allocation8 + $0x84] sm:$0xf]  ;;  %v3996_v36 = vld [vmem:[#allocation8 + $0x134] sm:$0xf0] }
  0xe5   :  { %1721 = vmatpush.bf16.msra.mxu1 %v3372_v18 }
  0xe6   :  { %1695 = vmatpush.bf16.msra.mxu2 %v3116_v27  ;;  %v3501_v27 = vld [vmem:[#allocation8 + $0xf8] sm:$0xf0] }
  0xe7   :  { %1682 = vmatpush.bf16.msra.mxu3 %v2988_v26  ;;  %1709 = vmatmul.bf16.vlgmr.msra.gmra.mxu0 %v4391_v39  ;;  %v3980_v39 = vld [vmem:[#allocation8 + $0xb4] sm:$0xf0]  ;;  %v3987_v26 = vld [vmem:[#allocation8 + $0xf4] sm:$0xf] }
  0xe8   :  { %v3468_v3 = vor.u32 %v3980_v39, %v3467_v61  ;;  %v1426_v4 = vpop.f32.mrf.mxu0  ;;  %v3504_v37 = vor.u32 %v3987_v26, %v3501_v27  ;;  %v348_v61 = vperm.slane %v4421_v6, 1  ;;  %v3998_v26 = vld [vmem:[#allocation8 + $0x144] sm:$0xf0] }
  0xe9   :  { %2138 = vmatpush.bf16.msrb.mxu1 %v3500_v32  ;;  %1696 = vmatmul.bf16.vlgmr.msra.gmra.mxu2 %v4389_v34  ;;  %v3476_v34 = vor.u32 %v3982_v54, %v3475_v52  ;;  %v4432_v35 = vpop.f32.mrf.mxu3  ;;  %v3444_v32 = vor.u32 %v3974_v25, %v3443_v24  ;;  %v3981_v52 = vld [vmem:[#allocation8 + $0xc4] sm:$0xf]  ;;  %v3477_v54 = vld [vmem:[#allocation8 + $0xc8] sm:$0xf0]  ;;  %v3453_v24 = vld [vmem:[#allocation8 + $0x98] sm:$0xf0] }
  0xea   :  { %1683 = vmatmul.bf16.vlgmr.msra.gmra.mxu3 %v4377_v60  ;;  %v1437_v60 = vpop.f32.mrf.mxu1  ;;  %v1464_v5 = vadd.f32 %v4432_v35, %v348_v61  ;;  %v3539_v25 = vld [vmem:[#allocation8 + $0x140] sm:$0xf]  ;;  %v4003_v61 = vld [vmem:[#allocation8 + $0x174] sm:$0xf] }
  0xeb   :  { %2125 = vmatpush.bf16.msrb.mxu3 %v3436_v28  ;;  %v1438_v41 = vadd.f32 %v1437_v60, %v1425_v0  ;;  %v3380_v28 = vor.u32 %v3958_v57, %v3379_v19  ;;  %v4004_v60 = vld [vmem:[#allocation8 + $0x174] sm:$0xf0]  ;;  %v3480_v0 = vor.u32 %v3981_v52, %v3477_v54 }
  0xec   :  { %v4436_v11 = vpop.f32.mrf.mxu2 }
  0xed   :  { %2139 = vmatpush.bf16.msrb.mxu1 %v3492_v44  ;;  %v1451_v18 = vadd.f32 %v1450_v38, %v1438_v41  ;;  %v3985_v38 = vld [vmem:[#allocation8 + $0xe4] sm:$0xf]  ;;  %v3967_v44 = vld [vmem:[#allocation8 + $0x54] sm:$0xf]  ;;  %v1477_v57 = vadd.f32 %v4436_v11, %v1464_v5  ;;  %v3531_v11 = vld [vmem:[#allocation8 + $0x130] sm:$0xf] }
  0xee   :  { %v3424_v20 = vor.u32 %v3967_v44, %v3421_v45  ;;  %v3977_v41 = vld [vmem:[#allocation8 + $0xa4] sm:$0xf]  ;;  %v3994_v44 = vld [vmem:[#allocation8 + $0x124] sm:$0xf0] }
  0xef   :  { %2126 = vmatpush.bf16.msrb.mxu3 %v3428_v40  ;;  %v1727_v30 = vmax.f32 %v1451_v18, 0.0  ;;  %v3493_v40 = vld [vmem:[#allocation8 + $0xe8] sm:$0xf0] }
  0xf0   :  { %v3496_v46 = vor.u32 %v3985_v38, %v3493_v40  ;;  %v3445_v38 = vld [vmem:[#allocation8 + $0x88] sm:$0xf0]  ;;  %v3532_v40 = vor.u32 %v3996_v36, %v3531_v11 }
  0xf1   :  { %2140 = vmatpush.bf16.msrb.mxu1 %v3484_v50  ;;  %v1465_v22 = vpop.f32.mrf.mxu3  ;;  %v4438_v42 = vpack.c.bf16 %v1727_v30, %v1727_v30  ;;  %v3413_v50 = vld [vmem:[#allocation8 + $0x48] sm:$0xf0]  ;;  %v3957_v30 = vld [vmem:[#allocation8 + $0x4] sm:$0xf] }
  0xf2   :  { %v1439_v8 = vpop.f32.mrf.mxu1  ;;  %v3464_v22 = vor.u32 %v3977_v41, %v3461_v13  ;;  %v4018_v13 = vld [vmem:[#allocation8 + $0x1e4] sm:$0xf0] }
  0xf3   :  { %2127 = vmatpush.bf16.msrb.mxu3 %v3420_v53  ;;  %v3485_v53 = vld [vmem:[#allocation8 + $0xd8] sm:$0xf0]  ;;  %v3397_v8 = vld [vmem:[#allocation8 + $0x28] sm:$0xf0] }
  0xf4   :  { %3376 = vmatmul.msk.bf16.vlgmr.msra.gmra.mxu1 %vm1359_vm0, %v4385_v48  ;;  %v3452_v48 = vor.u32 %v3976_v16, %v3451_v15  ;;  %v1478_v9 = vpop.f32.mrf.mxu2  ;;  %v3488_v51 = vor.u32 %v3983_v47, %v3485_v53  ;;  %v4000_v15 = vld [vmem:[#allocation8 + $0x154] sm:$0xf0]  ;;  %v3400_v19 = vor.u32 %v3961_v7, %v3397_v8  ;;  %v3999_v8 = vld [vmem:[#allocation8 + $0x154] sm:$0xf] }
  0xf5   :  { %2141 = vmatpush.bf16.msrb.mxu1 %v3476_v34  ;;  %v3416_v34 = vor.u32 %v3965_v49, %v3413_v50  ;;  %v3515_v50 = vld [vmem:[#allocation8 + $0x110] sm:$0xf] }
  0xf7   :  { %2128 = vmatpush.bf16.msrb.mxu3 %v3412_v58  ;;  %v3564_v58 = vor.u32 %v4004_v60, %v3563_v55 }
  0xf9   :  { %2142 = vmatpush.bf16.msrb.mxu1 %v3468_v3  ;;  %2151 = vmatpush.bf16.msrb.mxu2 %v3564_v58  ;;  %v3469_v3 = vld [vmem:[#allocation8 + $0xb8] sm:$0xf0]  ;;  %v3507_v58 = vld [vmem:[#allocation8 + $0x100] sm:$0xf] }
  0xfb   :  { %2129 = vmatpush.bf16.msrb.mxu3 %v3404_v63  ;;  %v3405_v63 = vld [vmem:[#allocation8 + $0x38] sm:$0xf0] }
  0xfc   :  { %v3408_v4 = vor.u32 %v3963_v62, %v3405_v63  ;;  %v4001_v62 = vld [vmem:[#allocation8 + $0x164] sm:$0xf] }
  0xfd   :  { %2143 = vmatpush.bf16.msrb.mxu1 %v3460_v14  ;;  %2152 = vmatpush.bf16.msrb.mxu2 %v3556_v1  ;;  %v3547_v14 = vld [vmem:[#allocation8 + $0x150] sm:$0xf] }
  0xfe   :  { %v3627_v1 = vld [vmem:[#allocation8 + $0x1f0] sm:$0xf] }
  0xff   :  { %2130 = vmatpush.bf16.msrb.mxu3 %v3396_v10  ;;  %v3472_v10 = vor.u32 %v3979_v2, %v3469_v3  ;;  %v4020_v2 = vld [vmem:[#allocation8 + $0x1f4] sm:$0xf0] }
 0x100   :  { %v1489_v56 = vpop.f32.mrf.mxu0  ;;  %v3628_v3 = vor.u32 %v4020_v2, %v3627_v1  ;;  %v4017_v2 = vld [vmem:[#allocation8 + $0x1e4] sm:$0xf] }
 0x101   :  { %2144 = vmatpush.bf16.msrb.mxu1 %v3452_v48  ;;  %v1502_v39 = vpop.f32.mrf.mxu1  ;;  %v3389_v48 = vld [vmem:[#allocation8 + $0x18] sm:$0xf0]  ;;  %v1490_v27 = vadd.f32 %v1489_v56, %v1477_v57 }
 0x102   :  { %v3392_v9 = vor.u32 %v3959_v21, %v3389_v48  ;;  %2164 = vmatpush.bf16.msrb.mxu0 %v3628_v3  ;;  %v3611_v48 = vld [vmem:[#allocation8 + $0x1d0] sm:$0xf]  ;;  %v3621_v3 = vld [vmem:[#allocation8 + $0x1e8] sm:$0xf0] }
 0x103   :  { %2131 = vmatpush.bf16.msrb.mxu3 %v3388_v17  ;;  %v3548_v17 = vor.u32 %v4000_v15, %v3547_v14  ;;  %v1503_v45 = vadd.f32 %v1502_v39, %v1490_v27  ;;  %v3565_v39 = vld [vmem:[#allocation8 + $0x178] sm:$0xf0]  ;;  %v4014_v27 = vld [vmem:[#allocation8 + $0x1c4] sm:$0xf0] }
 0x104   :  { %v3568_v63 = vor.u32 %v4003_v61, %v3565_v39  ;;  %v4019_v39 = vld [vmem:[#allocation8 + $0x1f4] sm:$0xf] }
 0x105   :  { %2145 = vmatpush.bf16.msrb.mxu1 %v3444_v32  ;;  %2153 = vmatpush.bf16.msrb.mxu2 %v3548_v17  ;;  %v3456_v32 = vor.u32 %v3975_v23, %v3453_v24  ;;  %v3997_v17 = vld [vmem:[#allocation8 + $0x144] sm:$0xf]  ;;  %v3995_v23 = vld [vmem:[#allocation8 + $0x134] sm:$0xf]  ;;  %v3533_v24 = vld [vmem:[#allocation8 + $0x138] sm:$0xf0] }
 0x107   :  { %2132 = vmatpush.bf16.msrb.mxu3 %v3380_v28  ;;  %v3540_v28 = vor.u32 %v3998_v26, %v3539_v25  ;;  %v3536_v25 = vor.u32 %v3995_v23, %v3533_v24  ;;  %v3603_v26 = vld [vmem:[#allocation8 + $0x1c0] sm:$0xf]  ;;  %v4009_v24 = vld [vmem:[#allocation8 + $0x1a4] sm:$0xf] }
 0x108   :  { %v1491_v16 = vpop.f32.mrf.mxu0 }
 0x109   :  { %2190 = vmatpush.bf16.msra.mxu1 %v3504_v37  ;;  %v1515_v12 = vpop.f32.mrf.mxu3  ;;  %v1504_v35 = vpop.f32.mrf.mxu1  ;;  %2154 = vmatpush.bf16.msrb.mxu2 %v3540_v28  ;;  %v3993_v28 = vld [vmem:[#allocation8 + $0x124] sm:$0xf] }
 0x10a   :  { %2133 = vmatmul.bf16.vlgmr.msrb.gmra.mxu3 %v4438_v42  ;;  %v1516_v53 = vadd.f32 %v1515_v12, %v1503_v45  ;;  %v3619_v12 = vld [vmem:[#allocation8 + $0x1e0] sm:$0xf]  ;;  %v4016_v35 = vld [vmem:[#allocation8 + $0x1d4] sm:$0xf0] }
 0x10b   :  { %2177 = vmatpush.bf16.msra.mxu3 %v3440_v31  ;;  %v3381_v31 = vld [vmem:[#allocation8 + $0x8] sm:$0xf0]  ;;  %v3620_v14 = vor.u32 %v4018_v13, %v3619_v12  ;;  %v3587_v45 = vld [vmem:[#allocation8 + $0x1a0] sm:$0xf]  ;;  %v3613_v12 = vld [vmem:[#allocation8 + $0x1d8] sm:$0xf0] }
 0x10c   :  { %v1528_v18 = vpop.f32.mrf.mxu2 }
 0x10d   :  { %2191 = vmatpush.bf16.msra.mxu1 %v3496_v46  ;;  %v3384_v46 = vor.u32 %v3957_v30, %v3381_v31  ;;  %2155 = vmatpush.bf16.msrb.mxu2 %v3532_v40  ;;  %v1529_v52 = vadd.f32 %v1528_v18, %v1516_v53  ;;  %v3541_v18 = vld [vmem:[#allocation8 + $0x148] sm:$0xf0]  ;;  %v3595_v31 = vld [vmem:[#allocation8 + $0x1b0] sm:$0xf]  ;;  %v3517_v40 = vld [vmem:[#allocation8 + $0x118] sm:$0xf0] }
 0x10e   :  { %2165 = vmatpush.bf16.msrb.mxu0 %v3620_v14  ;;  %v3544_v21 = vor.u32 %v3997_v17, %v3541_v18  ;;  %v3525_v30 = vld [vmem:[#allocation8 + $0x128] sm:$0xf0]  ;;  %v4013_v17 = vld [vmem:[#allocation8 + $0x1c4] sm:$0xf] }
 0x10f   :  { %2178 = vmatpush.bf16.msra.mxu3 %v3432_v43  ;;  %v3523_v43 = vld [vmem:[#allocation8 + $0x120] sm:$0xf]  ;;  %v3528_v36 = vor.u32 %v3993_v28, %v3525_v30  ;;  %v3605_v18 = vld [vmem:[#allocation8 + $0x1c8] sm:$0xf0]  ;;  %v3581_v28 = vld [vmem:[#allocation8 + $0x198] sm:$0xf0] }
 0x110   :  { %v3524_v49 = vor.u32 %v3994_v44, %v3523_v43  ;;  %v349_v43 = vperm.slane %v4421_v6, 2 }
 0x111   :  { %2192 = vmatpush.bf16.msra.mxu1 %v3488_v51  ;;  %v1517_v37 = vpop.f32.mrf.mxu3  ;;  %v3992_v51 = vld [vmem:[#allocation8 + $0x114] sm:$0xf0] }
 0x112   :  { %2156 = vmatpush.bf16.msrb.mxu2 %v3524_v49  ;;  %v3516_v54 = vor.u32 %v3992_v51, %v3515_v50  ;;  %v3989_v50 = vld [vmem:[#allocation8 + $0x104] sm:$0xf]  ;;  %v3509_v51 = vld [vmem:[#allocation8 + $0x108] sm:$0xf0] }
 0x113   :  { %2179 = vmatpush.bf16.msra.mxu3 %v3424_v20  ;;  %v3448_v20 = vor.u32 %v3973_v33, %v3445_v38  ;;  %v3991_v38 = vld [vmem:[#allocation8 + $0x114] sm:$0xf] }
 0x114   :  { %v1530_v47 = vpop.f32.mrf.mxu2 }
 0x115   :  { %2193 = vmatpush.bf16.msra.mxu1 %v3480_v0  ;;  %v3557_v0 = vld [vmem:[#allocation8 + $0x168] sm:$0xf0]  ;;  %v3520_v47 = vor.u32 %v3991_v38, %v3517_v40 }
 0x116   :  { %2157 = vmatpush.bf16.msrb.mxu2 %v3516_v54  ;;  %v3512_v54 = vor.u32 %v3989_v50, %v3509_v51 }
 0x117   :  { %2180 = vmatpush.bf16.msra.mxu3 %v3416_v34  ;;  %v3508_v34 = vor.u32 %v3990_v29, %v3507_v58 }
 0x119   :  { %2194 = vmatpush.bf16.msra.mxu1 %v3472_v10  ;;  %v1541_v55 = vpop.f32.mrf.mxu3  ;;  %v3549_v10 = vld [vmem:[#allocation8 + $0x158] sm:$0xf0] }
 0x11a   :  { %v1542_v60 = vadd.f32 %v1541_v55, %v1529_v52  ;;  %2158 = vmatpush.bf16.msrb.mxu2 %v3508_v34  ;;  %v3552_v41 = vor.u32 %v3999_v8, %v3549_v10  ;;  %v3579_v55 = vld [vmem:[#allocation8 + $0x190] sm:$0xf]  ;;  %v4006_v34 = vld [vmem:[#allocation8 + $0x184] sm:$0xf0] }
 0x11b   :  { %2181 = vmatpush.bf16.msra.mxu3 %v3408_v4 }
 0x11c   :  { %v1728_v56 = vmax.f32 %v1542_v60, 0.0  ;;  %v4008_v60 = vld [vmem:[#allocation8 + $0x194] sm:$0xf0] }
 0x11d   :  { %2195 = vmatpush.bf16.msra.mxu1 %v3464_v22  ;;  %v3612_v22 = vor.u32 %v4016_v35, %v3611_v48  ;;  %v4011_v35 = vld [vmem:[#allocation8 + $0x1b4] sm:$0xf] }
 0x11e   :  { %v1732_v59 = vpack.c.bf16 %v1728_v56, %v1728_v56  ;;  %2203 = vmatpush.bf16.msra.mxu2 %v3568_v63  ;;  %v3580_v56 = vor.u32 %v4008_v60, %v3579_v55 }
 0x11f   :  { %2182 = vmatpush.bf16.msra.mxu3 %v3400_v19  ;;  %2166 = vmatpush.bf16.msrb.mxu0 %v3612_v22  ;;  %v3597_v22 = vld [vmem:[#allocation8 + $0x1b8] sm:$0xf0] }
 0x120   :  { %2146 = vmatmul.bf16.vlgmr.msrb.gmra.mxu1 %v1732_v59  ;;  %v4445_v5 = vpop.f32.mrf.mxu0  ;;  %v3600_v23 = vor.u32 %v4011_v35, %v3597_v22  ;;  %v4029_v35 = vld [vmem:[#allocation10 + $0x40] sm:$0xff] }
 0x121   :  { %2196 = vmatpush.bf16.msra.mxu1 %v3456_v32  ;;  %v1543_v4 = vpop.f32.mrf.mxu3  ;;  %v1554_v7 = vpop.f32.mrf.mxu1  ;;  %v4012_v32 = vld [vmem:[#allocation8 + $0x1b4] sm:$0xf0] }
 0x122   :  { %v3596_v37 = vor.u32 %v4012_v32, %v3595_v31  ;;  %v4005_v31 = vld [vmem:[#allocation8 + $0x184] sm:$0xf]  ;;  %v3573_v32 = vld [vmem:[#allocation8 + $0x188] sm:$0xf0] }
 0x123   :  { %2183 = vmatpush.bf16.msra.mxu3 %v3392_v9  ;;  %v3604_v9 = vor.u32 %v4014_v27, %v3603_v26  ;;  %v4007_v27 = vld [vmem:[#allocation8 + $0x194] sm:$0xf] }
 0x124   :  { %v3584_v30 = vor.u32 %v4007_v27, %v3581_v28 }
 0x125   :  { %2197 = vmatpush.bf16.msra.mxu1 %v3448_v20  ;;  %2167 = vmatpush.bf16.msrb.mxu0 %v3604_v9  ;;  %v1555_v20 = vadd.f32 %v1554_v7, %v349_v43  ;;  %v3624_v7 = vor.u32 %v4017_v2, %v3621_v3  ;;  %v350_v9 = vperm.slane %v4421_v6, 3 }
 0x127   :  { %2184 = vmatpush.bf16.msra.mxu3 %v3384_v46  ;;  %v4010_v46 = vld [vmem:[#allocation8 + $0x1a4] sm:$0xf0] }
 0x128   :  { %v1582_v16 = vpop.f32.mrf.mxu0  ;;  %v3588_v53 = vor.u32 %v4010_v46, %v3587_v45 }
 0x129   :  { %v1556_v57 = vpop.f32.mrf.mxu1  ;;  %2168 = vmatpush.bf16.msrb.mxu0 %v3596_v37 }
 0x12a   :  { %2185 = vmatmul.bf16.vlgmr.msra.gmra.mxu3 %v4438_v42  ;;  %v3560_v42 = vor.u32 %v4001_v62, %v3557_v0  ;;  %v3629_v62 = vld [vmem:[#allocation8 + $0x1f8] sm:$0xf0]  ;;  %v3608_v57 = vor.u32 %v4013_v17, %v3605_v18  ;;  %v4033_v17 = vld [vmem:[#allocation10 + $0x60] sm:$0xff] }
 0x12b   :  { %v3632_v63 = vor.u32 %v4019_v39, %v3629_v62 }
 0x12c   :  { %2204 = vmatpush.bf16.msra.mxu2 %v3560_v42  ;;  %v1593_v19 = vpop.f32.mrf.mxu2 }
 0x12d   :  { %v1567_v15 = vpop.f32.mrf.mxu3  ;;  %2169 = vmatpush.bf16.msrb.mxu0 %v3588_v53 }
 0x12e   :  { %v1568_v52 = vadd.f32 %v1567_v15, %v1555_v20 }
 0x130   :  { %2205 = vmatpush.bf16.msra.mxu2 %v3552_v41  ;;  %2198 = vmatmul.bf16.vlgmr.msra.gmra.mxu1 %v1732_v59  ;;  %v1632_v11 = vpop.f32.mrf.mxu0  ;;  %v1581_v29 = vadd.f32 %v4445_v5, %v1568_v52  ;;  %v3571_v59 = vld [vmem:[#allocation8 + $0x180] sm:$0xf]  ;;  %v4015_v5 = vld [vmem:[#allocation8 + $0x1d4] sm:$0xf] }
 0x131   :  { %2170 = vmatpush.bf16.msrb.mxu0 %v3580_v56  ;;  %v3572_v61 = vor.u32 %v4006_v34, %v3571_v59  ;;  %v3616_v14 = vor.u32 %v4015_v5, %v3613_v12  ;;  %v4036_v5 = vld [vmem:[#allocation10 + $0x78] sm:$0xff]  ;;  %v4023_v12 = vld [vmem:[#allocation10 + $0x10] sm:$0xff] }
 0x132   :  { %v1594_v0 = vadd.f32 %v1593_v19, %v1581_v29  ;;  %2378 = vmatpush.bf16.msrb.mxu1 %v4036_v5 }
 0x134   :  { %2206 = vmatpush.bf16.msra.mxu2 %v3544_v21  ;;  %v1595_v44 = vpop.f32.mrf.mxu2 }
 0x135   :  { %v1569_v33 = vpop.f32.mrf.mxu3  ;;  %2171 = vmatpush.bf16.msrb.mxu0 %v3572_v61 }
 0x138   :  { %2207 = vmatpush.bf16.msra.mxu2 %v3536_v25  ;;  %v1634_v49 = vpop.f32.mrf.mxu0  ;;  %v3589_v25 = vld [vmem:[#allocation8 + $0x1a8] sm:$0xf0] }
 0x139   :  { %2216 = vmatpush.bf16.msra.mxu0 %v3632_v63  ;;  %v3592_v26 = vor.u32 %v4009_v24, %v3589_v25  ;;  %v4043_v24 = vld [vmem:[#allocation11 + $0x30] sm:$0xff] }
 0x13c   :  { %2208 = vmatpush.bf16.msra.mxu2 %v3528_v36  ;;  %v3576_v36 = vor.u32 %v4005_v31, %v3573_v32 }
 0x13d   :  { %2217 = vmatpush.bf16.msra.mxu0 %v3624_v7  ;;  %v4027_v7 = vld [vmem:[#allocation10 + $0x30] sm:$0xff] }
 0x140   :  { %2209 = vmatpush.bf16.msra.mxu2 %v3520_v47 }
 0x141   :  { %v1606_v58 = vpop.f32.mrf.mxu1  ;;  %2218 = vmatpush.bf16.msra.mxu0 %v3616_v14  ;;  %v4022_v14 = vld [vmem:[#allocation10 + $0x8] sm:$0xff] }
 0x142   :  { %v1607_v4 = vadd.f32 %v1606_v58, %v1594_v0  ;;  %v1799_v58 = vld [vmem:[%s4469_s4] sm:$0x3] }
 0x143   :  { %v1801_v29 = vperm.slane %v1799_v58, 0  ;;  %v1802_v0 = vperm.slane %v1799_v58, 1 }
 0x144   :  { %2210 = vmatpush.bf16.msra.mxu2 %v3512_v54  ;;  %v1658_v1 = vpop.f32.mrf.mxu0 }
 0x145   :  { %2219 = vmatpush.bf16.msra.mxu0 %v3608_v57  ;;  %v4031_v57 = vld [vmem:[#allocation10 + $0x50] sm:$0xff] }
 0x149   :  { %v1608_v42 = vpop.f32.mrf.mxu1  ;;  %2220 = vmatpush.bf16.msra.mxu0 %v3600_v23  ;;  %v4044_v23 = vld [vmem:[#allocation11 + $0x38] sm:$0xff] }
 0x14c   :  { %v1645_v41 = vpop.f32.mrf.mxu2  ;;  %v1660_v16 = vpop.f32.mrf.mxu0 }
 0x14d   :  { %v1619_v8 = vpop.f32.mrf.mxu3  ;;  %2221 = vmatpush.bf16.msra.mxu0 %v3592_v26  ;;  %v1646_v33 = vadd.f32 %v1645_v41, %v350_v9  ;;  %v4024_v41 = vld [vmem:[#allocation10 + $0x18] sm:$0xff]  ;;  %v4021_v16 = vld [vmem:[#allocation10] sm:$0xff]  ;;  %v4042_v26 = vld [vmem:[#allocation11 + $0x28] sm:$0xff] }
 0x14e   :  { %v1620_v10 = vadd.f32 %v1619_v8, %v1607_v4  ;;  %v4028_v4 = vld [vmem:[#allocation10 + $0x38] sm:$0xff]  ;;  %v4026_v8 = vld [vmem:[#allocation10 + $0x28] sm:$0xff] }
 0x14f   :  { %v1659_v37 = vadd.f32 %v1658_v1, %v1646_v33  ;;  %2365 = vmatpush.bf16.msrb.mxu3 %v4028_v4 }
 0x150   :  { %v1633_v13 = vadd.f32 %v1632_v11, %v1620_v10  ;;  %v4025_v10 = vld [vmem:[#allocation10 + $0x20] sm:$0xff] }
 0x151   :  { %2222 = vmatpush.bf16.msra.mxu0 %v3584_v30 }
 0x152   :  { %v1729_v15 = vmax.f32 %v1633_v13, 0.0  ;;  %v4035_v13 = vld [vmem:[#allocation10 + $0x70] sm:$0xff] }
 0x153   :  { %2366 = vmatpush.bf16.msrb.mxu3 %v4027_v7  ;;  %2379 = vmatpush.bf16.msrb.mxu1 %v4035_v13 }
 0x154   :  { %v1733_v19 = vpack.c.bf16 %v1729_v15, %v1729_v15  ;;  %v1647_v48 = vpop.f32.mrf.mxu2  ;;  %v4034_v15 = vld [vmem:[#allocation10 + $0x68] sm:$0xff] }
 0x155   :  { %v1621_v21 = vpop.f32.mrf.mxu3  ;;  %2223 = vmatpush.bf16.msra.mxu0 %v3576_v36  ;;  %v4030_v48 = vld [vmem:[#allocation10 + $0x48] sm:$0xff] }
 0x156   :  { %2159 = vmatmul.bf16.vlgmr.msrb.gmra.mxu2 %v1733_v19 }
 0x157   :  { %2367 = vmatpush.bf16.msrb.mxu3 %v4026_v8  ;;  %2380 = vmatpush.bf16.msrb.mxu1 %v4034_v15 }
 0x158   :  { %2461 = vmatpush.bf16.msrb.mxu2 %v4044_v23 }
 0x15b   :  { %2368 = vmatpush.bf16.msrb.mxu3 %v4025_v10  ;;  %2381 = vmatpush.bf16.msrb.mxu1 %v4033_v17 }
 0x15c   :  { %2462 = vmatpush.bf16.msrb.mxu2 %v4043_v24 }
 0x15f   :  { %2369 = vmatpush.bf16.msrb.mxu3 %v4024_v41 }
 0x160   :  { %2463 = vmatpush.bf16.msrb.mxu2 %v4042_v26 }
 0x161   :  { %v1671_v11 = vpop.f32.mrf.mxu1 }
 0x162   :  { %v1672_v40 = vadd.f32 %v1671_v11, %v1659_v37 }
 0x163   :  { %2370 = vmatpush.bf16.msrb.mxu3 %v4023_v12 }
 0x164   :  { %v1710_v38 = vpop.f32.mrf.mxu0 }
 0x166   :  { %2211 = vmatmul.bf16.vlgmr.msra.gmra.mxu2 %v1733_v19  ;;  %v4032_v19 = vld [vmem:[#allocation10 + $0x58] sm:$0xff] }
 0x167   :  { %2371 = vmatpush.bf16.msrb.mxu3 %v4022_v14  ;;  %2382 = vmatpush.bf16.msrb.mxu1 %v4032_v19 }
 0x169   :  { %v1673_v43 = vpop.f32.mrf.mxu1 }
 0x16a   :  { %v4041_v43 = vld [vmem:[#allocation11 + $0x20] sm:$0xff] }
 0x16b   :  { %2372 = vmatpush.bf16.msrb.mxu3 %v4021_v16  ;;  %2383 = vmatpush.bf16.msrb.mxu1 %v4031_v57 }
 0x16c   :  { %v1697_v46 = vpop.f32.mrf.mxu2  ;;  %v1712_v53 = vpop.f32.mrf.mxu0  ;;  %2464 = vmatpush.bf16.msrb.mxu2 %v4041_v43 }
 0x16d   :  { %v1684_v44 = vpop.f32.mrf.mxu3  ;;  %v4052_v53 = vld [vmem:[#allocation13 + $0x38] sm:$0xff] }
 0x16e   :  { %v1685_v45 = vadd.f32 %v1684_v44, %v1672_v40  ;;  %v4040_v44 = vld [vmem:[#allocation11 + $0x18] sm:$0xff] }
 0x16f   :  { %2384 = vmatpush.bf16.msrb.mxu1 %v4030_v48 }
 0x170   :  { %v1698_v47 = vadd.f32 %v1697_v46, %v1685_v45  ;;  %2465 = vmatpush.bf16.msrb.mxu2 %v4040_v44  ;;  %v4039_v45 = vld [vmem:[#allocation11 + $0x10] sm:$0xff]  ;;  %v4038_v46 = vld [vmem:[#allocation11 + $0x8] sm:$0xff] }
 0x171   :  { %v1723_v20 = vpop.f32.mrf.mxu1 }
 0x172   :  { %v1711_v6 = vadd.f32 %v1710_v38, %v1698_v47  ;;  %v4037_v47 = vld [vmem:[#allocation11] sm:$0xff] }
 0x173   :  { %2385 = vmatpush.bf16.msrb.mxu1 %v4029_v35 }
 0x174   :  { %v1724_v49 = vadd.f32 %v1723_v20, %v1711_v6  ;;  %v1699_v51 = vpop.f32.mrf.mxu2  ;;  %2466 = vmatpush.bf16.msrb.mxu2 %v4039_v45  ;;  %v4051_v6 = vld [vmem:[#allocation13 + $0x30] sm:$0xff]  ;;  %v4050_v20 = vld [vmem:[#allocation13 + $0x28] sm:$0xff] }
 0x175   :  { %v1686_v50 = vpop.f32.mrf.mxu3  ;;  %v4048_v51 = vld [vmem:[#allocation13 + $0x18] sm:$0xff] }
 0x176   :  { %v1730_v52 = vmax.f32 %v1724_v49, 0.0  ;;  %v4049_v50 = vld [vmem:[#allocation13 + $0x20] sm:$0xff] }
 0x178   :  { %v1734_v54 = vpack.c.bf16 %v1730_v52, %v1730_v52  ;;  %2467 = vmatpush.bf16.msrb.mxu2 %v4038_v46  ;;  %v4067_v52 = vld [vmem:[%s4471_s6] ss:$0 sm:$0xff] }
 0x179   :  { %v1725_v55 = vpop.f32.mrf.mxu1 }
 0x17a   :  { %2172 = vmatmul.bf16.vlgmr.msrb.gmra.mxu0 %v1734_v54  ;;  %v4047_v55 = vld [vmem:[#allocation13 + $0x10] sm:$0xff] }
 0x17b   :  { %2546 = vmatpush.bf16.msrb.mxu0 %v4052_v53 }
 0x17c   :  { %2468 = vmatpush.bf16.msrb.mxu2 %v4037_v47 }
 0x17f   :  { %2547 = vmatpush.bf16.msrb.mxu0 %v4051_v6 }
 0x183   :  { %2548 = vmatpush.bf16.msrb.mxu0 %v4050_v20 }
 0x187   :  { %2549 = vmatpush.bf16.msrb.mxu0 %v4049_v50 }
 0x18a   :  { %2224 = vmatmul.bf16.vlgmr.msra.gmra.mxu0 %v1734_v54 }
 0x18b   :  { %2550 = vmatpush.bf16.msrb.mxu0 %v4048_v51 }
 0x18d   :  { %v2134_v60 = vpop.f32.mrf.mxu3 }
 0x18e   :  { %v2135_v59 = vadd.f32 %v2134_v60, %v1801_v29 }
 0x18f   :  { %2551 = vmatpush.bf16.msrb.mxu0 %v4047_v55 }
 0x195   :  { %v2136_v56 = vpop.f32.mrf.mxu3 }
 0x19d   :  { %v2147_v34 = vpop.f32.mrf.mxu1 }
 0x19e   :  { %v2148_v39 = vadd.f32 %v2147_v34, %v2135_v59 }
 0x1a5   :  { %v2149_v62 = vpop.f32.mrf.mxu1 }
 0x1a6   :  { %v4068_v62 = vld [vmem:[%s4473_s8] ss:$0 sm:$0xff]  ;;  %s4291_s8 = smov [#allocation14]  }
 0x1a7   :  { %s2574_s17 = sshll.u32 %s4291_s8, 4  ;;  %s2575_s17 = int_to_ptr.vmem [resolvable:$true] %s2574_s17 }
 0x1ad   :  { %v2186_v61 = vpop.f32.mrf.mxu3  ;;  %v2199_v2 = vpop.f32.mrf.mxu1 }
 0x1ae   :  { %v2187_v1 = vadd.f32 %v2186_v61, %v1802_v0  ;;  %v4046_v61 = vld [vmem:[#allocation13 + $0x8] sm:$0xff] }
 0x1af   :  { %2552 = vmatpush.bf16.msrb.mxu0 %v4046_v61 }
 0x1b0   :  { %v2200_v3 = vadd.f32 %v2199_v2, %v2187_v1 }
 0x1b5   :  { %v2188_v63 = vpop.f32.mrf.mxu3  ;;  %v2201_v42 = vpop.f32.mrf.mxu1 }
 0x1b6   :  { %v4069_v42 = vld [vmem:[%s4475_s10] ss:$0 sm:$0xff] }
 0x1d9   :  { %v2160_v18 = vpop.f32.mrf.mxu2 }
 0x1da   :  { %v2161_v27 = vadd.f32 %v2160_v18, %v2148_v39  ;;  %v4045_v39 = vld [vmem:[#allocation13] sm:$0xff] }
 0x1db   :  { %2553 = vmatpush.bf16.msrb.mxu0 %v4045_v39 }
 0x1e1   :  { %v2162_v21 = vpop.f32.mrf.mxu2 }
 0x1e9   :  { %v2212_v22 = vpop.f32.mrf.mxu2 }
 0x1ea   :  { %v2213_v33 = vadd.f32 %v2212_v22, %v2200_v3 }
 0x1f1   :  { %v2214_v25 = vpop.f32.mrf.mxu2 }
 0x1f7   :  { %v2173_v28 = vpop.f32.mrf.mxu0 }
 0x1f8   :  { %v2174_v9 = vadd.f32 %v2173_v28, %v2161_v27 }
 0x1fa   :  { %v2229_v30 = vmax.f32 %v2174_v9, 0.0 }
 0x1fc   :  { %v2231_v31 = vpack.c.bf16 %v2229_v30, %v2229_v30 }
 0x1fe   :  { %2373 = vmatmul.bf16.vlgmr.msrb.gmra.mxu3 %v2231_v31 }
 0x1ff   :  { %v2175_v32 = vpop.f32.mrf.mxu0 }
 0x207   :  { %v2225_v11 = vpop.f32.mrf.mxu0 }
 0x208   :  { %v2226_v36 = vadd.f32 %v2225_v11, %v2213_v33 }
 0x20a   :  { %v2230_v37 = vmax.f32 %v2226_v36, 0.0 }
 0x20c   :  { %v2232_v38 = vpack.c.bf16 %v2230_v37, %v2230_v37 }
 0x20e   :  { %2386 = vmatmul.bf16.vlgmr.msrb.gmra.mxu1 %v2232_v38 }
 0x20f   :  { %v2227_v40 = vpop.f32.mrf.mxu0 }
 0x281   :  { %v2374_v49 = vpop.f32.mrf.mxu3 }
 0x282   :  { %v2375_v60 = vadd.f32 %v4067_v52, %v2374_v49 }
 0x289   :  { %v2376_v54 = vpop.f32.mrf.mxu3 }
 0x28b   :  { %v2387_v56 = vpop.f32.mrf.mxu1 }
 0x28c   :  { %v2388_v58 = vadd.f32 %v2387_v56, %v2375_v60 }
 0x28e   :  { %4070 = vtanh.f32 %v2388_v58 }
 0x293   :  { %v2389_v29 = vpop.f32.mrf.mxu1 }
 0x294   :  { %v4071_v59 = vpop.eup %4070 }
 0x295   :  { %v2392_v34 = vpack.c.bf16 %v4071_v59, %v4071_v59 }
 0x297   :  { %2469 = vmatmul.bf16.vlgmr.msrb.gmra.mxu2 %v2392_v34 }
 0x31a   :  { %v2470_v63 = vpop.f32.mrf.mxu2 }
 0x31b   :  { %v2471_v0 = vadd.f32 %v4068_v62, %v2470_v63 }
 0x31d   :  { %vm2474_vm1 = vcmp.gt.f32.partialorder %v2471_v0, 0.0  ;;  %v2475_v1 = vmul.f32 0.1, %v2471_v0 }
 0x31f   :  { %v2476_v2 = vsel %vm2474_vm1, %v2471_v0, %v2475_v1 }
 0x320   :  { %v2477_v3 = vpack.c.bf16 %v2476_v2, %v2476_v2 }
 0x322   :  { %v2472_v4 = vpop.f32.mrf.mxu2  ;;  %2554 = vmatmul.bf16.vlgmr.msrb.gmra.mxu0 %v2477_v3 }
 0x39f   :  { %v2555_v7 = vpop.f32.mrf.mxu0 }
 0x3a0   :  { %v2556_v8 = vadd.f32 %v4069_v42, %v2555_v7 }
 0x3a2   :  { %2559 = vmax.xlane.f32.xlu0 %v2556_v8 }
 0x3a7   :  { %v2557_v10 = vpop.f32.mrf.mxu0 }
 0x415   :  { %v2560_v41 = vpop.xlane.xlu0 %2559 }
 0x416   :  { %v2561_v5 = vsub.f32 %v2556_v8, %v2560_v41 }
 0x418   :  { %v2562_v12 = vmul.f32 1.442695, %v2561_v5 }
 0x41a   :  { %4072 = vpow2.f32 %v2562_v12 }
 0x420   :  { %v4073_v13 = vpop.eup %4072 }
 0x421   :  { %2564 = vadd.xlane.f32.xlu0 %v4073_v13 }
 0x494   :  { %v2565_v14 = vpop.xlane.xlu0 %2564 }
 0x495   :  { %4074 = vrcp.f32 %v2565_v14 }
 0x49b   :  { %v4075_v15 = vpop.eup %4074 }
 0x49c   :  { %v2567_v16 = vmul.f32 %v4075_v15, %v4073_v13 }
 0x49e   :  { %2568 = vst [vmem:[#allocation14] sm:$0xff] %v2567_v16 }
 0x49f   :  { %2579 = dma.vmem_to_hbm [thread:$0]  %s2575_s17, 128, %s2577_s20, [#allocation4]  }
 0x4a0   :  { %4276 = dma.done.wait [#allocation4], 128  }
 0x4a1   :  { %4277 = vsyncadd [#allocation4], 4294967168 }
 0x4a2   :  { %2584 = vsyncpa [#allocation3], 1 }
 0x4a3   :  { %2585 = vsyncpa [#allocation6], 1 }
 0x4a4   :  { %2586 = vsyncpa [#allocation9], 1 }
 0x4a5   :  { %2587 = vsyncpa [#allocation12], 1 }
 0x4a6   :  { %2588 = vsyncpa [#allocation4], 1 }

</bundles_post_ra>
